<compile_context>
chip_gen: v7x
topology: tpu7x:2x2x1
jax: 0.10.0
libtpu: 0.0.40
codegen_flags: <defaults>
</compile_context>

<pallas_src>
import jax
import jax.numpy as jnp
from jax import lax
from jax.experimental import pallas as pl
from jax.experimental.pallas import tpu as pltpu

EPS = 1e-5


def _make_kernel(N, H, W, C):
    NWC = N * W * C
    M = N * H * W              # elements per channel for BN statistics
    inv_m = 1.0 / M

    def kernel(x_ref, w_ref, bn_ref, cred_ref, cbc_ref, out_ref):
        x2d = x_ref[...]                          # (H, N*W*C) lane-dense rows
        cred = cred_ref[...]                      # (N*W*C, C)  lane -> channel reduce
        cbc = cbc_ref[...]                        # (C, N*W*C)  channel -> lane broadcast
        bn = bn_ref[...]                          # (4, C) = [g1; b1; g2; b2]

        # Row-shift masks, computed once (the conv helper is traced twice).
        h_idx = lax.broadcasted_iota(jnp.int32, (H, 1), 0)
        not_top = (h_idx != 0).astype(jnp.float32)        # zero the h-1 wrap at h == 0
        not_bot = (h_idx != H - 1).astype(jnp.float32)    # zero the h+1 wrap at h == H-1

        def conv3x3(y, widx):
            # Three aligned (H, NWC) x (NWC, NWC) MXU matmuls; SAME padding along W
            # lives in zero bands of the weights, padding along H in the masks above.
            up = not_top * pltpu.roll(y, 1, axis=0)        # y[h-1, :]
            dn = not_bot * pltpu.roll(y, H - 1, axis=0)    # y[h+1, :]
            acc = jnp.dot(up, w_ref[3 * widx + 0], preferred_element_type=jnp.float32)
            acc = acc + jnp.dot(y, w_ref[3 * widx + 1], preferred_element_type=jnp.float32)
            acc = acc + jnp.dot(dn, w_ref[3 * widx + 2], preferred_element_type=jnp.float32)
            return acc

        def batchnorm(y, g, b):
            # Training-mode BN: biased batch stats over (N, H, W); two-pass variance.
            s1 = jnp.dot(jnp.sum(y, axis=0, keepdims=True), cred,
                         preferred_element_type=jnp.float32)             # (1, C)
            mean = s1 * inv_m
            mean_l = jnp.dot(mean, cbc, preferred_element_type=jnp.float32)  # (1, NWC)
            d = y - mean_l
            s2 = jnp.dot(jnp.sum(d * d, axis=0, keepdims=True), cred,
                         preferred_element_type=jnp.float32)             # (1, C)
            scale = g * lax.rsqrt(s2 * inv_m + EPS)                      # (1, C)
            ss = jnp.concatenate([scale, b], axis=0)                     # (2, C)
            ss_l = jnp.dot(ss, cbc, preferred_element_type=jnp.float32)  # (2, NWC)
            return d * ss_l[0:1, :] + ss_l[1:2, :]

        y = conv3x3(x2d, 0)
        y = jnp.maximum(batchnorm(y, bn[0:1, :], bn[1:2, :]), 0.0)
        y = conv3x3(y, 1)
        y = batchnorm(y, bn[2:3, :], bn[3:4, :])
        out_ref[...] = jnp.maximum(x2d + y, 0.0)                          # residual + ReLU

    return kernel


def _tap_weights(w_hwio, N, W):
    """Fold HWIO (3,3,Cin,Cout) weights into three per-tap banded matrices.

    Returns (3, N*W*C, N*W*C): one matrix per kernel row dy, block-diagonal over
    the N images packed into the lane axis.  Within an image block,
    entry [(w_in)*C + ci, (w_out)*C + co] = w[dy, dx, ci, co] with
    w_in = w_out + dx - 1; out-of-range taps are zero entries (SAME padding).
    """
    C = w_hwio.shape[2]
    pos = jnp.arange(W)
    eye_n = jnp.eye(N, dtype=w_hwio.dtype)
    taps = []
    for dy in range(3):
        blk = jnp.zeros((W * C, W * C), w_hwio.dtype)
        for dx in range(3):
            sel = (pos[:, None] == (pos[None, :] + dx - 1)).astype(w_hwio.dtype)
            blk = blk + jnp.einsum("pw,io->piwo", sel,
                                   w_hwio[dy, dx]).reshape(W * C, W * C)
        taps.append(jnp.kron(eye_n, blk))
    return jnp.stack(taps, axis=0)


@jax.jit
def residual5_nchw(x_nchw, w1_oihw, g1, b1, w2_oihw, g2, b2):
    """PyTorch-layout entry point (NCHW input, OIHW conv weights, BN affine params)."""
    N, C, H, W = x_nchw.shape
    NWC = N * W * C

    # Lane-dense view: rows = h, lanes = n*(W*C) + w*C + c  (128 lanes here).
    x2d = jnp.transpose(x_nchw, (2, 0, 3, 1)).reshape(H, NWC)

    # One consolidated weight operand: (6, NWC, NWC) = [conv1 dy0..2, conv2 dy0..2].
    w_all = jnp.concatenate(
        [_tap_weights(jnp.transpose(w1_oihw, (2, 3, 1, 0)), N, W),
         _tap_weights(jnp.transpose(w2_oihw, (2, 3, 1, 0)), N, W)], axis=0)

    # One consolidated BN-parameter operand.
    bn_params = jnp.stack([g1, b1, g2, b2]).astype(jnp.float32)          # (4, C)

    # 0/1 indicator matrices mapping lanes (n*W*C + w*C + c) <-> channels c.
    cred = jnp.tile(jnp.eye(C, dtype=jnp.float32), (N * W, 1))           # (NWC, C)
    cbc = cred.T                                                         # (C, NWC)

    cost = pl.CostEstimate(
        flops=2 * 3 * 2 * H * NWC * NWC + 24 * H * NWC,
        transcendentals=2 * C,
        bytes_accessed=4 * (2 * H * NWC + 6 * NWC * NWC + 4 * C + 2 * NWC * C),
    )

    out2d = pl.pallas_call(
        _make_kernel(N, H, W, C),
        out_shape=jax.ShapeDtypeStruct((H, NWC), jnp.float32),
        in_specs=[pl.BlockSpec(memory_space=pltpu.MemorySpace.VMEM)] * 5,
        out_specs=pl.BlockSpec(memory_space=pltpu.MemorySpace.VMEM),
        cost_estimate=cost,
        compiler_params=pltpu.CompilerParams(vmem_limit_bytes=4 * 1024 * 1024),
    )(x2d, w_all, bn_params, cred, cbc)

    # Undo the lane packing: (H, N*W*C) -> NCHW.
    return jnp.transpose(out2d.reshape(H, N, W, C), (1, 3, 0, 2))


def _reference_nhwc(x, w1, g1, b1, w2, g2, b2):
    """Plain-JAX reference (NHWC), for correctness checking only."""
    def conv(inp, w):
        return lax.conv_general_dilated(
            inp, w, window_strides=(1, 1), padding="SAME",
            dimension_numbers=("NHWC", "HWIO", "NHWC"))

    def bn(y, g, b):
        mean = jnp.mean(y, axis=(0, 1, 2), keepdims=True)
        var = jnp.mean((y - mean) ** 2, axis=(0, 1, 2), keepdims=True)
        return (y - mean) * lax.rsqrt(var + EPS) * g + b

    y = jax.nn.relu(bn(conv(x, w1), g1, b1))
    y = bn(conv(y, w2), g2, b2)
    return jax.nn.relu(x + y)


if __name__ == "__main__":
    # Residual add requires in_channels == out_channels.
    N, C, H, W = 2, 4, 16, 16

    key = jax.random.PRNGKey(0)
    kx, kw1, kw2 = jax.random.split(key, 3)

    x_nchw = jax.random.normal(kx, (N, C, H, W), jnp.float32)
    # Deterministic synthetic weights (PyTorch OIHW conv layout); BN affine at default init.
    w1_oihw = 0.1 * jax.random.normal(kw1, (C, C, 3, 3), jnp.float32)
    w2_oihw = 0.1 * jax.random.normal(kw2, (C, C, 3, 3), jnp.float32)
    g1 = jnp.ones((C,), jnp.float32)
    b1 = jnp.zeros((C,), jnp.float32)
    g2 = jnp.ones((C,), jnp.float32)
    b2 = jnp.zeros((C,), jnp.float32)

    out = residual5_nchw(x_nchw, w1_oihw, g1, b1, w2_oihw, g2, b2)
    out = jax.block_until_ready(out)

    # Cross-check against plain-JAX reference.
    x_nhwc = jnp.transpose(x_nchw, (0, 2, 3, 1))
    ref = _reference_nhwc(x_nhwc,
                          jnp.transpose(w1_oihw, (2, 3, 1, 0)), g1, b1,
                          jnp.transpose(w2_oihw, (2, 3, 1, 0)), g2, b2)
    ref = jnp.transpose(ref, (0, 3, 1, 2))
    assert out.shape == (N, C, H, W)
    assert jnp.allclose(out, ref, atol=2e-4, rtol=2e-4), \
        float(jnp.max(jnp.abs(out - ref)))

    print("KERNEL_OK")
</pallas_src>

<mosaic_0001>
module attributes {stable_mosaic.version = 11 : i64} {
  func.func @kernel(%arg0: memref<16x128xf32, #tpu.memory_space<vmem>>, %arg1: memref<6x128x128xf32, #tpu.memory_space<vmem>>, %arg2: memref<4x4xf32, #tpu.memory_space<vmem>>, %arg3: memref<128x4xf32, #tpu.memory_space<vmem>>, %arg4: memref<4x128xf32, #tpu.memory_space<vmem>>, %arg5: memref<16x128xf32, #tpu.memory_space<vmem>>) attributes {dimension_semantics = [], scalar_prefetch = 0 : i64, scratch_operands = 0 : i64, tpu.core_type = #tpu.core_type<tc>} {
    %c0 = arith.constant 0 : index
    %c0_0 = arith.constant 0 : index
    %0 = vector.load %arg0[%c0, %c0_0] : memref<16x128xf32, #tpu.memory_space<vmem>>, vector<16x128xf32>
    %c0_1 = arith.constant 0 : index
    %c0_2 = arith.constant 0 : index
    %1 = vector.load %arg3[%c0_1, %c0_2] : memref<128x4xf32, #tpu.memory_space<vmem>>, vector<128x4xf32>
    %c0_3 = arith.constant 0 : index
    %c0_4 = arith.constant 0 : index
    %2 = vector.load %arg4[%c0_3, %c0_4] : memref<4x128xf32, #tpu.memory_space<vmem>>, vector<4x128xf32>
    %c0_5 = arith.constant 0 : index
    %c0_6 = arith.constant 0 : index
    %3 = vector.load %arg2[%c0_5, %c0_6] : memref<4x4xf32, #tpu.memory_space<vmem>>, vector<4x4xf32>
    %4 = tpu.iota {dimensions = array<i32: 0>} : vector<16x1xi32>
    %c0_i32 = arith.constant 0 : i32
    %5 = vector.broadcast %c0_i32 : i32 to vector<16x1xi32>
    %6 = arith.cmpi ne, %4, %5 : vector<16x1xi32>
    %7 = arith.extui %6 : vector<16x1xi1> to vector<16x1xi32>
    %8 = arith.sitofp %7 : vector<16x1xi32> to vector<16x1xf32>
    %c15_i32 = arith.constant 15 : i32
    %9 = vector.broadcast %c15_i32 : i32 to vector<16x1xi32>
    %10 = arith.cmpi ne, %4, %9 : vector<16x1xi32>
    %11 = arith.extui %10 : vector<16x1xi1> to vector<16x1xi32>
    %12 = arith.sitofp %11 : vector<16x1xi32> to vector<16x1xf32>
    %c1_i32 = arith.constant 1 : i32
    %13 = tpu.dynamic_rotate %0 by %c1_i32 dim 0 : vector<16x128xf32>, i32 -> vector<16x128xf32>
    %14 = vector.broadcast %8 : vector<16x1xf32> to vector<16x128xf32>
    %15 = arith.mulf %14, %13 : vector<16x128xf32>
    %c15_i32_7 = arith.constant 15 : i32
    %16 = tpu.dynamic_rotate %0 by %c15_i32_7 dim 0 : vector<16x128xf32>, i32 -> vector<16x128xf32>
    %17 = vector.broadcast %12 : vector<16x1xf32> to vector<16x128xf32>
    %18 = arith.mulf %17, %16 : vector<16x128xf32>
    %c0_8 = arith.constant 0 : index
    %c0_9 = arith.constant 0 : index
    %c0_10 = arith.constant 0 : index
    %19 = vector.load %arg1[%c0_8, %c0_9, %c0_10] : memref<6x128x128xf32, #tpu.memory_space<vmem>>, vector<1x128x128xf32>
    %20 = vector.shape_cast %19 : vector<1x128x128xf32> to vector<128x128xf32>
    %cst = arith.constant dense<0.000000e+00> : vector<16x128xf32>
    %21 = tpu.matmul %15, %20, %cst {dimension_numbers = #tpu.dot_dimension_numbers<[1], [0], [0], [1], [0, 0, 1, 1], [], []>} : vector<16x128xf32>, vector<128x128xf32>, vector<16x128xf32> -> vector<16x128xf32>
    %c1 = arith.constant 1 : index
    %c0_11 = arith.constant 0 : index
    %c0_12 = arith.constant 0 : index
    %22 = vector.load %arg1[%c1, %c0_11, %c0_12] : memref<6x128x128xf32, #tpu.memory_space<vmem>>, vector<1x128x128xf32>
    %23 = vector.shape_cast %22 : vector<1x128x128xf32> to vector<128x128xf32>
    %cst_13 = arith.constant dense<0.000000e+00> : vector<16x128xf32>
    %24 = tpu.matmul %0, %23, %cst_13 {dimension_numbers = #tpu.dot_dimension_numbers<[1], [0], [0], [1], [0, 0, 1, 1], [], []>} : vector<16x128xf32>, vector<128x128xf32>, vector<16x128xf32> -> vector<16x128xf32>
    %25 = arith.addf %21, %24 : vector<16x128xf32>
    %c2 = arith.constant 2 : index
    %c0_14 = arith.constant 0 : index
    %c0_15 = arith.constant 0 : index
    %26 = vector.load %arg1[%c2, %c0_14, %c0_15] : memref<6x128x128xf32, #tpu.memory_space<vmem>>, vector<1x128x128xf32>
    %27 = vector.shape_cast %26 : vector<1x128x128xf32> to vector<128x128xf32>
    %cst_16 = arith.constant dense<0.000000e+00> : vector<16x128xf32>
    %28 = tpu.matmul %18, %27, %cst_16 {dimension_numbers = #tpu.dot_dimension_numbers<[1], [0], [0], [1], [0, 0, 1, 1], [], []>} : vector<16x128xf32>, vector<128x128xf32>, vector<16x128xf32> -> vector<16x128xf32>
    %29 = arith.addf %25, %28 : vector<16x128xf32>
    %30 = vector.extract_strided_slice %3 {offsets = [0, 0], sizes = [1, 4], strides = [1, 1]} : vector<4x4xf32> to vector<1x4xf32>
    %31 = vector.extract_strided_slice %3 {offsets = [1, 0], sizes = [1, 4], strides = [1, 1]} : vector<4x4xf32> to vector<1x4xf32>
    %cst_17 = arith.constant dense<0.000000e+00> : vector<128xf32>
    %32 = vector.multi_reduction <add>, %29, %cst_17 [0] : vector<16x128xf32> to vector<128xf32>
    %33 = vector.shape_cast %32 : vector<128xf32> to vector<1x128xf32>
    %cst_18 = arith.constant dense<0.000000e+00> : vector<1x4xf32>
    %34 = tpu.matmul %33, %1, %cst_18 {dimension_numbers = #tpu.dot_dimension_numbers<[1], [0], [0], [1], [0, 0, 1, 1], [], []>} : vector<1x128xf32>, vector<128x4xf32>, vector<1x4xf32> -> vector<1x4xf32>
    %cst_19 = arith.constant 0.001953125 : f32
    %35 = vector.broadcast %cst_19 : f32 to vector<1x4xf32>
    %36 = arith.mulf %34, %35 : vector<1x4xf32>
    %cst_20 = arith.constant dense<0.000000e+00> : vector<1x128xf32>
    %37 = tpu.matmul %36, %2, %cst_20 {dimension_numbers = #tpu.dot_dimension_numbers<[1], [0], [0], [1], [0, 0, 1, 1], [], []>} : vector<1x4xf32>, vector<4x128xf32>, vector<1x128xf32> -> vector<1x128xf32>
    %38 = vector.broadcast %37 : vector<1x128xf32> to vector<16x128xf32>
    %39 = arith.subf %29, %38 : vector<16x128xf32>
    %40 = arith.mulf %39, %39 : vector<16x128xf32>
    %cst_21 = arith.constant dense<0.000000e+00> : vector<128xf32>
    %41 = vector.multi_reduction <add>, %40, %cst_21 [0] : vector<16x128xf32> to vector<128xf32>
    %42 = vector.shape_cast %41 : vector<128xf32> to vector<1x128xf32>
    %cst_22 = arith.constant dense<0.000000e+00> : vector<1x4xf32>
    %43 = tpu.matmul %42, %1, %cst_22 {dimension_numbers = #tpu.dot_dimension_numbers<[1], [0], [0], [1], [0, 0, 1, 1], [], []>} : vector<1x128xf32>, vector<128x4xf32>, vector<1x4xf32> -> vector<1x4xf32>
    %cst_23 = arith.constant 0.001953125 : f32
    %44 = vector.broadcast %cst_23 : f32 to vector<1x4xf32>
    %45 = arith.mulf %43, %44 : vector<1x4xf32>
    %cst_24 = arith.constant 9.99999974E-6 : f32
    %46 = vector.broadcast %cst_24 : f32 to vector<1x4xf32>
    %47 = arith.addf %45, %46 : vector<1x4xf32>
    %48 = math.rsqrt %47 : vector<1x4xf32>
    %49 = arith.mulf %30, %48 : vector<1x4xf32>
    %50 = tpu.concatenate %49, %31 in 0 : vector<1x4xf32>, vector<1x4xf32> -> vector<2x4xf32>
    %cst_25 = arith.constant dense<0.000000e+00> : vector<2x128xf32>
    %51 = tpu.matmul %50, %2, %cst_25 {dimension_numbers = #tpu.dot_dimension_numbers<[1], [0], [0], [1], [0, 0, 1, 1], [], []>} : vector<2x4xf32>, vector<4x128xf32>, vector<2x128xf32> -> vector<2x128xf32>
    %52 = vector.extract_strided_slice %51 {offsets = [0, 0], sizes = [1, 128], strides = [1, 1]} : vector<2x128xf32> to vector<1x128xf32>
    %53 = vector.broadcast %52 : vector<1x128xf32> to vector<16x128xf32>
    %54 = arith.mulf %39, %53 : vector<16x128xf32>
    %55 = vector.extract_strided_slice %51 {offsets = [1, 0], sizes = [1, 128], strides = [1, 1]} : vector<2x128xf32> to vector<1x128xf32>
    %56 = vector.broadcast %55 : vector<1x128xf32> to vector<16x128xf32>
    %57 = arith.addf %54, %56 : vector<16x128xf32>
    %cst_26 = arith.constant 0.000000e+00 : f32
    %58 = vector.broadcast %cst_26 : f32 to vector<16x128xf32>
    %59 = arith.maximumf %57, %58 : vector<16x128xf32>
    %c1_i32_27 = arith.constant 1 : i32
    %60 = tpu.dynamic_rotate %59 by %c1_i32_27 dim 0 : vector<16x128xf32>, i32 -> vector<16x128xf32>
    %61 = vector.broadcast %8 : vector<16x1xf32> to vector<16x128xf32>
    %62 = arith.mulf %61, %60 : vector<16x128xf32>
    %c15_i32_28 = arith.constant 15 : i32
    %63 = tpu.dynamic_rotate %59 by %c15_i32_28 dim 0 : vector<16x128xf32>, i32 -> vector<16x128xf32>
    %64 = vector.broadcast %12 : vector<16x1xf32> to vector<16x128xf32>
    %65 = arith.mulf %64, %63 : vector<16x128xf32>
    %c3 = arith.constant 3 : index
    %c0_29 = arith.constant 0 : index
    %c0_30 = arith.constant 0 : index
    %66 = vector.load %arg1[%c3, %c0_29, %c0_30] : memref<6x128x128xf32, #tpu.memory_space<vmem>>, vector<1x128x128xf32>
    %67 = vector.shape_cast %66 : vector<1x128x128xf32> to vector<128x128xf32>
    %cst_31 = arith.constant dense<0.000000e+00> : vector<16x128xf32>
    %68 = tpu.matmul %62, %67, %cst_31 {dimension_numbers = #tpu.dot_dimension_numbers<[1], [0], [0], [1], [0, 0, 1, 1], [], []>} : vector<16x128xf32>, vector<128x128xf32>, vector<16x128xf32> -> vector<16x128xf32>
    %c4 = arith.constant 4 : index
    %c0_32 = arith.constant 0 : index
    %c0_33 = arith.constant 0 : index
    %69 = vector.load %arg1[%c4, %c0_32, %c0_33] : memref<6x128x128xf32, #tpu.memory_space<vmem>>, vector<1x128x128xf32>
    %70 = vector.shape_cast %69 : vector<1x128x128xf32> to vector<128x128xf32>
    %cst_34 = arith.constant dense<0.000000e+00> : vector<16x128xf32>
    %71 = tpu.matmul %59, %70, %cst_34 {dimension_numbers = #tpu.dot_dimension_numbers<[1], [0], [0], [1], [0, 0, 1, 1], [], []>} : vector<16x128xf32>, vector<128x128xf32>, vector<16x128xf32> -> vector<16x128xf32>
    %72 = arith.addf %68, %71 : vector<16x128xf32>
    %c5 = arith.constant 5 : index
    %c0_35 = arith.constant 0 : index
    %c0_36 = arith.constant 0 : index
    %73 = vector.load %arg1[%c5, %c0_35, %c0_36] : memref<6x128x128xf32, #tpu.memory_space<vmem>>, vector<1x128x128xf32>
    %74 = vector.shape_cast %73 : vector<1x128x128xf32> to vector<128x128xf32>
    %cst_37 = arith.constant dense<0.000000e+00> : vector<16x128xf32>
    %75 = tpu.matmul %65, %74, %cst_37 {dimension_numbers = #tpu.dot_dimension_numbers<[1], [0], [0], [1], [0, 0, 1, 1], [], []>} : vector<16x128xf32>, vector<128x128xf32>, vector<16x128xf32> -> vector<16x128xf32>
    %76 = arith.addf %72, %75 : vector<16x128xf32>
    %77 = vector.extract_strided_slice %3 {offsets = [2, 0], sizes = [1, 4], strides = [1, 1]} : vector<4x4xf32> to vector<1x4xf32>
    %78 = vector.extract_strided_slice %3 {offsets = [3, 0], sizes = [1, 4], strides = [1, 1]} : vector<4x4xf32> to vector<1x4xf32>
    %cst_38 = arith.constant dense<0.000000e+00> : vector<128xf32>
    %79 = vector.multi_reduction <add>, %76, %cst_38 [0] : vector<16x128xf32> to vector<128xf32>
    %80 = vector.shape_cast %79 : vector<128xf32> to vector<1x128xf32>
    %cst_39 = arith.constant dense<0.000000e+00> : vector<1x4xf32>
    %81 = tpu.matmul %80, %1, %cst_39 {dimension_numbers = #tpu.dot_dimension_numbers<[1], [0], [0], [1], [0, 0, 1, 1], [], []>} : vector<1x128xf32>, vector<128x4xf32>, vector<1x4xf32> -> vector<1x4xf32>
    %cst_40 = arith.constant 0.001953125 : f32
    %82 = vector.broadcast %cst_40 : f32 to vector<1x4xf32>
    %83 = arith.mulf %81, %82 : vector<1x4xf32>
    %cst_41 = arith.constant dense<0.000000e+00> : vector<1x128xf32>
    %84 = tpu.matmul %83, %2, %cst_41 {dimension_numbers = #tpu.dot_dimension_numbers<[1], [0], [0], [1], [0, 0, 1, 1], [], []>} : vector<1x4xf32>, vector<4x128xf32>, vector<1x128xf32> -> vector<1x128xf32>
    %85 = vector.broadcast %84 : vector<1x128xf32> to vector<16x128xf32>
    %86 = arith.subf %76, %85 : vector<16x128xf32>
    %87 = arith.mulf %86, %86 : vector<16x128xf32>
    %cst_42 = arith.constant dense<0.000000e+00> : vector<128xf32>
    %88 = vector.multi_reduction <add>, %87, %cst_42 [0] : vector<16x128xf32> to vector<128xf32>
    %89 = vector.shape_cast %88 : vector<128xf32> to vector<1x128xf32>
    %cst_43 = arith.constant dense<0.000000e+00> : vector<1x4xf32>
    %90 = tpu.matmul %89, %1, %cst_43 {dimension_numbers = #tpu.dot_dimension_numbers<[1], [0], [0], [1], [0, 0, 1, 1], [], []>} : vector<1x128xf32>, vector<128x4xf32>, vector<1x4xf32> -> vector<1x4xf32>
    %cst_44 = arith.constant 0.001953125 : f32
    %91 = vector.broadcast %cst_44 : f32 to vector<1x4xf32>
    %92 = arith.mulf %90, %91 : vector<1x4xf32>
    %cst_45 = arith.constant 9.99999974E-6 : f32
    %93 = vector.broadcast %cst_45 : f32 to vector<1x4xf32>
    %94 = arith.addf %92, %93 : vector<1x4xf32>
    %95 = math.rsqrt %94 : vector<1x4xf32>
    %96 = arith.mulf %77, %95 : vector<1x4xf32>
    %97 = tpu.concatenate %96, %78 in 0 : vector<1x4xf32>, vector<1x4xf32> -> vector<2x4xf32>
    %cst_46 = arith.constant dense<0.000000e+00> : vector<2x128xf32>
    %98 = tpu.matmul %97, %2, %cst_46 {dimension_numbers = #tpu.dot_dimension_numbers<[1], [0], [0], [1], [0, 0, 1, 1], [], []>} : vector<2x4xf32>, vector<4x128xf32>, vector<2x128xf32> -> vector<2x128xf32>
    %99 = vector.extract_strided_slice %98 {offsets = [0, 0], sizes = [1, 128], strides = [1, 1]} : vector<2x128xf32> to vector<1x128xf32>
    %100 = vector.broadcast %99 : vector<1x128xf32> to vector<16x128xf32>
    %101 = arith.mulf %86, %100 : vector<16x128xf32>
    %102 = vector.extract_strided_slice %98 {offsets = [1, 0], sizes = [1, 128], strides = [1, 1]} : vector<2x128xf32> to vector<1x128xf32>
    %103 = vector.broadcast %102 : vector<1x128xf32> to vector<16x128xf32>
    %104 = arith.addf %101, %103 : vector<16x128xf32>
    %105 = arith.addf %0, %104 : vector<16x128xf32>
    %cst_47 = arith.constant 0.000000e+00 : f32
    %106 = vector.broadcast %cst_47 : f32 to vector<16x128xf32>
    %107 = arith.maximumf %105, %106 : vector<16x128xf32>
    %c0_48 = arith.constant 0 : index
    %c0_49 = arith.constant 0 : index
    %108 = vector.load %arg5[%c0_48, %c0_49] : memref<16x128xf32, #tpu.memory_space<vmem>>, vector<16x128xf32>
    tpu.vector_store %arg5[%c0_48, %c0_49], %107 {strides = array<i32>} : memref<16x128xf32, #tpu.memory_space<vmem>>, vector<16x128xf32>,
    return
  }
}

</mosaic_0001>

<bundles_post_ra>
// kernel: tile.9
= control target key start
LH: loop header
LB: loop body
LE: loop exit
PB: predicated region body
PF: predicated region fallthrough
CT: control target
= control target key end

     0   :  { %vm5_vm0 = vcmask 1041409   ;;  %vm9_vm1 = vcmask 1042434   ;;  %vm13_vm2 = vcmask 1043459   ;;  %s739_s30 = smov 124   ;;  %s740_s8 = smov 116   ;;  %vm15_vm3 = vcmask 31744   ;;  %s1264_s0 = inlined_call_operand.vmem [shape: f32[32,4,4], index: 0, kind: input, shape index: {}]   ;;  %s1265_s1 = inlined_call_operand.vmem [shape: f32[128,4], index: 1, kind: output, shape index: {}]  }
   0x1   :  { %v584_v0 = vld [vmem:[%s1264_s0 + $0x1f] sm:$0x1]   ;;  %v592_v5 = vld [vmem:[%s1264_s0 + $0x1d] sm:$0x1]   ;;  %v588_v11 = vld [vmem:[%s1264_s0 + $0x1e] sm:$0x1]  }
   0x2   :  { %v585_v1 = vld [vmem:[%s1264_s0 + $0x3e] sm:$0x2]   ;;  %v593_v6 = vld [vmem:[%s1264_s0 + $0x3c] sm:$0x2]   ;;  %v589_v14 = vld [vmem:[%s1264_s0 + $0x3d] sm:$0x2]  }
   0x3   :  { %v586_v2 = vld [vmem:[%s1264_s0 + $0x5d] sm:$0x4]   ;;  %v22_v4 = vsel %vm5_vm0, %v585_v1, %v584_v0  ;;  %v594_v7 = vld [vmem:[%s1264_s0 + $0x5b] sm:$0x4]   ;;  %v58_v9 = vsel %vm5_vm0, %v593_v6, %v592_v5  ;;  %v590_v15 = vld [vmem:[%s1264_s0 + $0x5c] sm:$0x4]   ;;  %v40_v18 = vsel %vm5_vm0, %v589_v14, %v588_v11 }
   0x4   :  { %v587_v3 = vld [vmem:[%s1264_s0 + $0x7c] sm:$0x8]   ;;  %v26_v8 = vsel %vm9_vm1, %v586_v2, %v22_v4  ;;  %v595_v10 = vld [vmem:[%s1264_s0 + $0x7a] sm:$0x8]   ;;  %v62_v13 = vsel %vm9_vm1, %v594_v7, %v58_v9  ;;  %v591_v16 = vld [vmem:[%s1264_s0 + $0x7b] sm:$0x8]   ;;  %v44_v22 = vsel %vm9_vm1, %v590_v15, %v40_v18 }
   0x5   :  { %v30_v12 = vsel %vm13_vm2, %v587_v3, %v26_v8  ;;  %v66_v17 = vsel %vm13_vm2, %v595_v10, %v62_v13  ;;  %v596_v19 = vld [vmem:[%s1264_s0 + $0x1c] sm:$0x1]   ;;  %v600_v25 = vld [vmem:[%s1264_s0 + $0x1b] sm:$0x1]   ;;  %v48_v26 = vsel %vm13_vm2, %v591_v16, %v44_v22  ;;  %v604_v33 = vld [vmem:[%s1264_s0 + $0x1a] sm:$0x1]  }
   0x6   :  { %31 = vrot.lane.b32.xlu0 %v30_v12, %s739_s30  ;;  %v597_v20 = vld [vmem:[%s1264_s0 + $0x3b] sm:$0x2]   ;;  %67 = vrot.lane.b32.xlu1 %v66_v17, %s740_s8  ;;  %v601_v28 = vld [vmem:[%s1264_s0 + $0x3a] sm:$0x2]   ;;  %s741_s25 = smov 120   ;;  %s742_s30 = smov 112  }
   0x7   :  { %v598_v21 = vld [vmem:[%s1264_s0 + $0x5a] sm:$0x4]   ;;  %v76_v23 = vsel %vm5_vm0, %v597_v20, %v596_v19  ;;  %v602_v29 = vld [vmem:[%s1264_s0 + $0x59] sm:$0x4]   ;;  %v94_v32 = vsel %vm5_vm0, %v601_v28, %v600_v25  ;;  %v605_v34 = vld [vmem:[%s1264_s0 + $0x39] sm:$0x2]  }
   0x8   :  { %v599_v24 = vld [vmem:[%s1264_s0 + $0x79] sm:$0x8]   ;;  %v80_v27 = vsel %vm9_vm1, %v598_v21, %v76_v23  ;;  %v603_v30 = vld [vmem:[%s1264_s0 + $0x78] sm:$0x8]   ;;  %v606_v35 = vld [vmem:[%s1264_s0 + $0x58] sm:$0x4]   ;;  %v98_v36 = vsel %vm9_vm1, %v602_v29, %v94_v32  ;;  %v112_v37 = vsel %vm5_vm0, %v605_v34, %v604_v33 }
   0x9   :  { %v84_v31 = vsel %vm13_vm2, %v599_v24, %v80_v27  ;;  %v607_v38 = vld [vmem:[%s1264_s0 + $0x77] sm:$0x8]   ;;  %v608_v39 = vld [vmem:[%s1264_s0 + $0x19] sm:$0x1]   ;;  %v102_v40 = vsel %vm13_vm2, %v603_v30, %v98_v36  ;;  %v116_v41 = vsel %vm9_vm1, %v606_v35, %v112_v37  ;;  %v612_v47 = vld [vmem:[%s1264_s0 + $0x18] sm:$0x1]  }
   0xa   :  { %49 = vrot.lane.b32.xlu0 %v48_v26, %s741_s25  ;;  %85 = vrot.lane.b32.xlu1 %v84_v31, %s742_s30  ;;  %v609_v42 = vld [vmem:[%s1264_s0 + $0x38] sm:$0x2]   ;;  %v120_v45 = vsel %vm13_vm2, %v607_v38, %v116_v41  ;;  %v613_v48 = vld [vmem:[%s1264_s0 + $0x37] sm:$0x2]   ;;  %s743_s18 = smov 108   ;;  %s744_s23 = smov 104  }
   0xb   :  { %v610_v43 = vld [vmem:[%s1264_s0 + $0x57] sm:$0x4]   ;;  %v130_v46 = vsel %vm5_vm0, %v609_v42, %v608_v39  ;;  %v614_v49 = vld [vmem:[%s1264_s0 + $0x56] sm:$0x4]   ;;  %v148_v51 = vsel %vm5_vm0, %v613_v48, %v612_v47  ;;  %v616_v53 = vld [vmem:[%s1264_s0 + $0x17] sm:$0x1]  }
   0xc   :  { %v611_v44 = vld [vmem:[%s1264_s0 + $0x76] sm:$0x8]   ;;  %v134_v50 = vsel %vm9_vm1, %v610_v43, %v130_v46  ;;  %v615_v52 = vld [vmem:[%s1264_s0 + $0x75] sm:$0x8]   ;;  %v152_v54 = vsel %vm9_vm1, %v614_v49, %v148_v51  ;;  %v617_v55 = vld [vmem:[%s1264_s0 + $0x36] sm:$0x2]  }
   0xd   :  { %v618_v56 = vld [vmem:[%s1264_s0 + $0x55] sm:$0x4]   ;;  %v138_v57 = vsel %vm13_vm2, %v611_v44, %v134_v50  ;;  %v166_v58 = vsel %vm5_vm0, %v617_v55, %v616_v53  ;;  %v620_v59 = vld [vmem:[%s1264_s0 + $0x16] sm:$0x1]   ;;  %v156_v62 = vsel %vm13_vm2, %v615_v52, %v152_v54  ;;  %v624_v2 = vld [vmem:[%s1264_s0 + $0x15] sm:$0x1]  }
   0xe   :  { %103 = vrot.lane.b32.xlu0 %v102_v40, %s743_s18  ;;  %121 = vrot.lane.b32.xlu1 %v120_v45, %s744_s23  ;;  %v621_v60 = vld [vmem:[%s1264_s0 + $0x35] sm:$0x2]   ;;  %v170_v63 = vsel %vm9_vm1, %v618_v56, %v166_v58  ;;  %v619_v0 = vld [vmem:[%s1264_s0 + $0x74] sm:$0x8]   ;;  %s745_s11 = smov 100   ;;  %s746_s18 = smov 96  }
   0xf   :  { %v622_v61 = vld [vmem:[%s1264_s0 + $0x54] sm:$0x4]   ;;  %v184_v1 = vsel %vm5_vm0, %v621_v60, %v620_v59  ;;  %v625_v5 = vld [vmem:[%s1264_s0 + $0x34] sm:$0x2]   ;;  %v628_v8 = vld [vmem:[%s1264_s0 + $0x14] sm:$0x1]   ;;  %v174_v11 = vsel %vm13_vm2, %v619_v0, %v170_v63 }
  0x10   :  { %v188_v3 = vsel %vm9_vm1, %v622_v61, %v184_v1  ;;  %v623_v4 = vld [vmem:[%s1264_s0 + $0x73] sm:$0x8]   ;;  %v626_v6 = vld [vmem:[%s1264_s0 + $0x53] sm:$0x4]   ;;  %v202_v7 = vsel %vm5_vm0, %v625_v5, %v624_v2  ;;  %v629_v9 = vld [vmem:[%s1264_s0 + $0x33] sm:$0x2]  }
  0x11   :  { %v630_v10 = vld [vmem:[%s1264_s0 + $0x52] sm:$0x4]   ;;  %v220_v12 = vsel %vm5_vm0, %v629_v9, %v628_v8  ;;  %v632_v13 = vld [vmem:[%s1264_s0 + $0x13] sm:$0x1]   ;;  %v192_v14 = vsel %vm13_vm2, %v623_v4, %v188_v3  ;;  %v206_v15 = vsel %vm9_vm1, %v626_v6, %v202_v7  ;;  %v627_v16 = vld [vmem:[%s1264_s0 + $0x72] sm:$0x8]  }
  0x12   :  { %139 = vrot.lane.b32.xlu0 %v138_v57, %s745_s11  ;;  %157 = vrot.lane.b32.xlu1 %v156_v62, %s746_s18  ;;  %v631_v17 = vld [vmem:[%s1264_s0 + $0x71] sm:$0x8]   ;;  %v633_v18 = vld [vmem:[%s1264_s0 + $0x32] sm:$0x2]   ;;  %v224_v19 = vsel %vm9_vm1, %v630_v10, %v220_v12  ;;  %s747_s4 = smov 92   ;;  %s748_s9 = smov 88   ;;  %v210_v27 = vsel %vm13_vm2, %v627_v16, %v206_v15 }
  0x13   :  { %v238_v20 = vsel %vm5_vm0, %v633_v18, %v632_v13  ;;  %v634_v21 = vld [vmem:[%s1264_s0 + $0x51] sm:$0x4]   ;;  %v636_v22 = vld [vmem:[%s1264_s0 + $0x12] sm:$0x1]   ;;  %v640_v26 = vld [vmem:[%s1264_s0 + $0x11] sm:$0x1]   ;;  %v228_v29 = vsel %vm13_vm2, %v631_v17, %v224_v19 }
  0x14   :  { %v637_v23 = vld [vmem:[%s1264_s0 + $0x31] sm:$0x2]   ;;  %v641_v28 = vld [vmem:[%s1264_s0 + $0x30] sm:$0x2]   ;;  %v242_v30 = vsel %vm9_vm1, %v634_v21, %v238_v20  ;;  %v635_v31 = vld [vmem:[%s1264_s0 + $0x70] sm:$0x8]  }
  0x15   :  { %v256_v24 = vsel %vm5_vm0, %v637_v23, %v636_v22  ;;  %v638_v25 = vld [vmem:[%s1264_s0 + $0x50] sm:$0x4]   ;;  %v644_v32 = vld [vmem:[%s1264_s0 + $0x10] sm:$0x1]   ;;  %v274_v36 = vsel %vm5_vm0, %v641_v28, %v640_v26  ;;  %v642_v37 = vld [vmem:[%s1264_s0 + $0x4f] sm:$0x4]   ;;  %v246_v42 = vsel %vm13_vm2, %v635_v31, %v242_v30 }
  0x16   :  { %175 = vrot.lane.b32.xlu0 %v174_v11, %s747_s4  ;;  %193 = vrot.lane.b32.xlu1 %v192_v14, %s748_s9  ;;  %v645_v33 = vld [vmem:[%s1264_s0 + $0x2f] sm:$0x2]   ;;  %v260_v34 = vsel %vm9_vm1, %v638_v25, %v256_v24  ;;  %v639_v35 = vld [vmem:[%s1264_s0 + $0x6f] sm:$0x8]   ;;  %s749_s22 = smov 84   ;;  %s750_s29 = smov 80   ;;  %v278_v46 = vsel %vm9_vm1, %v642_v37, %v274_v36 }
  0x17   :  { %v292_v38 = vsel %vm5_vm0, %v645_v33, %v644_v32  ;;  %v646_v39 = vld [vmem:[%s1264_s0 + $0x4e] sm:$0x4]   ;;  %v648_v40 = vld [vmem:[%s1264_s0 + $0xf] sm:$0x1]   ;;  %v652_v43 = vld [vmem:[%s1264_s0 + $0xe] sm:$0x1]   ;;  %v264_v45 = vsel %vm13_vm2, %v639_v35, %v260_v34 }
  0x18   :  { %v649_v41 = vld [vmem:[%s1264_s0 + $0x2e] sm:$0x2]   ;;  %v653_v44 = vld [vmem:[%s1264_s0 + $0x2d] sm:$0x2]   ;;  %v643_v47 = vld [vmem:[%s1264_s0 + $0x6e] sm:$0x8]   ;;  %v296_v48 = vsel %vm9_vm1, %v646_v39, %v292_v38 }
  0x19   :  { %v647_v49 = vld [vmem:[%s1264_s0 + $0x6d] sm:$0x8]   ;;  %v310_v50 = vsel %vm5_vm0, %v649_v41, %v648_v40  ;;  %v650_v51 = vld [vmem:[%s1264_s0 + $0x4d] sm:$0x4]   ;;  %s751_s11 = smov 76   ;;  %v328_v52 = vsel %vm5_vm0, %v653_v44, %v652_v43  ;;  %s752_s18 = smov 72   ;;  %v282_v56 = vsel %vm13_vm2, %v643_v47, %v278_v46 }
  0x1a   :  { %211 = vrot.lane.b32.xlu0 %v210_v27, %s749_s22  ;;  %229 = vrot.lane.b32.xlu1 %v228_v29, %s750_s29  ;;  %v654_v53 = vld [vmem:[%s1264_s0 + $0x4c] sm:$0x4]   ;;  %v656_v54 = vld [vmem:[%s1264_s0 + $0xd] sm:$0x1]   ;;  %v300_v59 = vsel %vm13_vm2, %v647_v49, %v296_v48  ;;  %v314_v60 = vsel %vm9_vm1, %v650_v51, %v310_v50  ;;  %s753_s29 = smov 68   ;;  %s754_s7 = smov 64  }
  0x1b   :  { %v657_v55 = vld [vmem:[%s1264_s0 + $0x2c] sm:$0x2]   ;;  %v660_v57 = vld [vmem:[%s1264_s0 + $0xc] sm:$0x1]   ;;  %v651_v61 = vld [vmem:[%s1264_s0 + $0x6c] sm:$0x8]   ;;  %v332_v62 = vsel %vm9_vm1, %v654_v53, %v328_v52 }
  0x1c   :  { %v661_v58 = vld [vmem:[%s1264_s0 + $0x2b] sm:$0x2]   ;;  %v655_v63 = vld [vmem:[%s1264_s0 + $0x6b] sm:$0x8]   ;;  %v346_v0 = vsel %vm5_vm0, %v657_v55, %v656_v54  ;;  %v658_v1 = vld [vmem:[%s1264_s0 + $0x4b] sm:$0x4]   ;;  %v318_v6 = vsel %vm13_vm2, %v651_v61, %v314_v60 }
  0x1d   :  { %v364_v2 = vsel %vm5_vm0, %v661_v58, %v660_v57  ;;  %v662_v3 = vld [vmem:[%s1264_s0 + $0x4a] sm:$0x4]   ;;  %v664_v4 = vld [vmem:[%s1264_s0 + $0xb] sm:$0x1]   ;;  %v668_v7 = vld [vmem:[%s1264_s0 + $0xa] sm:$0x1]   ;;  %v336_v9 = vsel %vm13_vm2, %v655_v63, %v332_v62  ;;  %v350_v10 = vsel %vm9_vm1, %v658_v1, %v346_v0 }
  0x1e   :  { %247 = vrot.lane.b32.xlu0 %v246_v42, %s751_s11  ;;  %265 = vrot.lane.b32.xlu1 %v264_v45, %s752_s18  ;;  %v665_v5 = vld [vmem:[%s1264_s0 + $0x2a] sm:$0x2]   ;;  %v669_v8 = vld [vmem:[%s1264_s0 + $0x29] sm:$0x2]   ;;  %v368_v12 = vsel %vm9_vm1, %v662_v3, %v364_v2  ;;  %s755_s18 = smov 60   ;;  %s756_s25 = smov 56  }
  0x1f   :  { %v659_v11 = vld [vmem:[%s1264_s0 + $0x6a] sm:$0x8]   ;;  %v663_v13 = vld [vmem:[%s1264_s0 + $0x69] sm:$0x8]   ;;  %v382_v14 = vsel %vm5_vm0, %v665_v5, %v664_v4  ;;  %v666_v15 = vld [vmem:[%s1264_s0 + $0x49] sm:$0x4]   ;;  %v400_v16 = vsel %vm5_vm0, %v669_v8, %v668_v7 }
  0x20   :  { %v670_v17 = vld [vmem:[%s1264_s0 + $0x48] sm:$0x4]   ;;  %v672_v18 = vld [vmem:[%s1264_s0 + $0x9] sm:$0x1]   ;;  %v354_v20 = vsel %vm13_vm2, %v659_v11, %v350_v10  ;;  %v676_v21 = vld [vmem:[%s1264_s0 + $0x8] sm:$0x1]   ;;  %v372_v23 = vsel %vm13_vm2, %v663_v13, %v368_v12  ;;  %v386_v24 = vsel %vm9_vm1, %v666_v15, %v382_v14 }
  0x21   :  { %v673_v19 = vld [vmem:[%s1264_s0 + $0x28] sm:$0x2]   ;;  %v677_v22 = vld [vmem:[%s1264_s0 + $0x27] sm:$0x2]   ;;  %v667_v25 = vld [vmem:[%s1264_s0 + $0x68] sm:$0x8]   ;;  %v404_v26 = vsel %vm9_vm1, %v670_v17, %v400_v16 }
  0x22   :  { %283 = vrot.lane.b32.xlu0 %v282_v56, %s753_s29  ;;  %301 = vrot.lane.b32.xlu1 %v300_v59, %s754_s7  ;;  %v671_v27 = vld [vmem:[%s1264_s0 + $0x67] sm:$0x8]   ;;  %v418_v28 = vsel %vm5_vm0, %v673_v19, %v672_v18  ;;  %v674_v29 = vld [vmem:[%s1264_s0 + $0x47] sm:$0x4]   ;;  %s757_s7 = smov 52   ;;  %v436_v30 = vsel %vm5_vm0, %v677_v22, %v676_v21  ;;  %s758_s14 = smov 48   ;;  %v390_v34 = vsel %vm13_vm2, %v667_v25, %v386_v24 }
  0x23   :  { %v678_v31 = vld [vmem:[%s1264_s0 + $0x46] sm:$0x4]   ;;  %v680_v32 = vld [vmem:[%s1264_s0 + $0x7] sm:$0x1]   ;;  %v684_v35 = vld [vmem:[%s1264_s0 + $0x6] sm:$0x1]   ;;  %v408_v37 = vsel %vm13_vm2, %v671_v27, %v404_v26  ;;  %v422_v38 = vsel %vm9_vm1, %v674_v29, %v418_v28 }
  0x24   :  { %v681_v33 = vld [vmem:[%s1264_s0 + $0x26] sm:$0x2]   ;;  %v685_v36 = vld [vmem:[%s1264_s0 + $0x25] sm:$0x2]   ;;  %v675_v39 = vld [vmem:[%s1264_s0 + $0x66] sm:$0x8]   ;;  %v440_v40 = vsel %vm9_vm1, %v678_v31, %v436_v30 }
  0x25   :  { %v679_v41 = vld [vmem:[%s1264_s0 + $0x65] sm:$0x8]   ;;  %v454_v42 = vsel %vm5_vm0, %v681_v33, %v680_v32  ;;  %v682_v43 = vld [vmem:[%s1264_s0 + $0x45] sm:$0x4]   ;;  %v472_v45 = vsel %vm5_vm0, %v685_v36, %v684_v35  ;;  %v686_v46 = vld [vmem:[%s1264_s0 + $0x44] sm:$0x4]   ;;  %v426_v49 = vsel %vm13_vm2, %v675_v39, %v422_v38 }
  0x26   :  { %319 = vrot.lane.b32.xlu0 %v318_v6, %s755_s18  ;;  %337 = vrot.lane.b32.xlu1 %v336_v9, %s756_s25  ;;  %s759_s25 = smov 44   ;;  %v683_v44 = vld [vmem:[%s1264_s0 + $0x64] sm:$0x8]   ;;  %v688_v47 = vld [vmem:[%s1264_s0 + $0x5] sm:$0x1]   ;;  %s760_s5 = smov 40   ;;  %v444_v53 = vsel %vm13_vm2, %v679_v41, %v440_v40  ;;  %v458_v54 = vsel %vm9_vm1, %v682_v43, %v454_v42  ;;  %v476_v58 = vsel %vm9_vm1, %v686_v46, %v472_v45 }
  0x27   :  { %v689_v48 = vld [vmem:[%s1264_s0 + $0x24] sm:$0x2]   ;;  %v687_v50 = vld [vmem:[%s1264_s0 + $0x63] sm:$0x8]   ;;  %v692_v51 = vld [vmem:[%s1264_s0 + $0x4] sm:$0x1]   ;;  %v462_v3 = vsel %vm13_vm2, %v683_v44, %v458_v54 }
  0x28   :  { %v693_v52 = vld [vmem:[%s1264_s0 + $0x23] sm:$0x2]   ;;  %v690_v55 = vld [vmem:[%s1264_s0 + $0x43] sm:$0x4]   ;;  %v582_v57 = vld [vmem:[%s1264_s0 + $0x3e] sm:$0x4]   ;;  %v490_v59 = vsel %vm5_vm0, %v689_v48, %v688_v47  ;;  %v480_v7 = vsel %vm13_vm2, %v687_v50, %v476_v58 }
  0x29   :  { %v694_v56 = vld [vmem:[%s1264_s0 + $0x42] sm:$0x4]   ;;  %v583_v60 = vld [vmem:[%s1264_s0 + $0x5d] sm:$0x8]   ;;  %s761_s24 = smov 36   ;;  %v508_v63 = vsel %vm5_vm0, %v693_v52, %v692_v51  ;;  %s762_s29 = smov 32   ;;  %v494_v8 = vsel %vm9_vm1, %v690_v55, %v490_v59 }
  0x2a   :  { %355 = vrot.lane.b32.xlu0 %v354_v20, %s757_s7  ;;  %373 = vrot.lane.b32.xlu1 %v372_v23, %s758_s14  ;;  %v2_v61 = vld [vmem:[%s1264_s0] sm:$0x1]   ;;  %v696_v0 = vld [vmem:[%s1264_s0 + $0x3] sm:$0x1]   ;;  %v512_v11 = vsel %vm9_vm1, %v694_v56, %v508_v63  ;;  %s763_s11 = smov 28   ;;  %s764_s18 = smov 24  }
  0x2b   :  { %v581_v62 = vld [vmem:[%s1264_s0 + $0x1f] sm:$0x2]   ;;  %v697_v1 = vld [vmem:[%s1264_s0 + $0x22] sm:$0x2]   ;;  %v700_v4 = vld [vmem:[%s1264_s0 + $0x2] sm:$0x1]  }
  0x2c   :  { %v6_v2 = vsel %vm5_vm0, %v581_v62, %v2_v61  ;;  %v701_v5 = vld [vmem:[%s1264_s0 + $0x21] sm:$0x2]   ;;  %v691_v9 = vld [vmem:[%s1264_s0 + $0x62] sm:$0x8]   ;;  %v695_v12 = vld [vmem:[%s1264_s0 + $0x61] sm:$0x8]   ;;  %v526_v13 = vsel %vm5_vm0, %v697_v1, %v696_v0 }
  0x2d   :  { %v10_v6 = vsel %vm9_vm1, %v582_v57, %v6_v2  ;;  %v698_v14 = vld [vmem:[%s1264_s0 + $0x41] sm:$0x4]   ;;  %v544_v15 = vsel %vm5_vm0, %v701_v5, %v700_v4  ;;  %v702_v16 = vld [vmem:[%s1264_s0 + $0x40] sm:$0x4]   ;;  %v704_v17 = vld [vmem:[%s1264_s0 + $0x1] sm:$0x1]   ;;  %v498_v19 = vsel %vm13_vm2, %v691_v9, %v494_v8  ;;  %v516_v20 = vsel %vm13_vm2, %v695_v12, %v512_v11 }
  0x2e   :  { %391 = vrot.lane.b32.xlu0 %v390_v34, %s759_s25  ;;  %409 = vrot.lane.b32.xlu1 %v408_v37, %s760_s5  ;;  %v14_v10 = vsel %vm13_vm2, %v583_v60, %v10_v6  ;;  %v705_v18 = vld [vmem:[%s1264_s0 + $0x20] sm:$0x2]   ;;  %v530_v21 = vsel %vm9_vm1, %v698_v14, %v526_v13  ;;  %v699_v22 = vld [vmem:[%s1264_s0 + $0x60] sm:$0x8]   ;;  %v548_v23 = vsel %vm9_vm1, %v702_v16, %v544_v15  ;;  %s765_s25 = smov 20   ;;  %s766_s26 = smov 16  }
  0x2f   :  { %16 = vst.msk [vmem:[#allocation0] sm:$0xf] %vm15_vm3, %v14_v10   ;;  %v703_v24 = vld [vmem:[%s1264_s0 + $0x5f] sm:$0x8]   ;;  %v562_v25 = vsel %vm5_vm0, %v705_v18, %v704_v17  ;;  %v706_v26 = vld [vmem:[%s1264_s0 + $0x3f] sm:$0x4]   ;;  %v534_v27 = vsel %vm13_vm2, %v699_v22, %v530_v21 }
  0x30   :  { %v552_v28 = vsel %vm13_vm2, %v703_v24, %v548_v23  ;;  %v566_v29 = vsel %vm9_vm1, %v706_v26, %v562_v25  ;;  %v707_v30 = vld [vmem:[%s1264_s0 + $0x5e] sm:$0x8]   ;;  %s767_s0 = smov 12   ;;  %s769_s30 = smov 4   ;;  %vm33_vm4 = vcmask 1048544   ;;  %vm51_vm5 = vcmask 1015744  }
  0x31   :  { %v570_v31 = vsel %vm13_vm2, %v707_v30, %v566_v29  ;;  %vm69_vm6 = vcmask 982944   ;;  %vm87_vm7 = vcmask 950144   ;;  %vm105_vm8 = vcmask 917344  }
  0x32   :  { %427 = vrot.lane.b32.xlu0 %v426_v49, %s761_s24  ;;  %445 = vrot.lane.b32.xlu1 %v444_v53, %s762_s29  ;;  %s768_s29 = smov 8   ;;  %vm123_vm9 = vcmask 884544   ;;  %vm141_vm10 = vcmask 851744   ;;  %vm159_vm11 = vcmask 818944   ;;  %vm177_vm12 = vcmask 786144  }
  0x33   :  { %vm195_vm13 = vcmask 753344   ;;  %vm213_vm14 = vcmask 720544   ;;  %vm231_vm15 = vcmask 687744   ;;  %vm249_vm0 = vcmask 654944  }
  0x34   :  { %vm267_vm1 = vcmask 622144   ;;  %vm285_vm2 = vcmask 589344   ;;  %vm303_vm3 = vcmask 556544  }
  0x36   :  { %463 = vrot.lane.b32.xlu0 %v462_v3, %s763_s11  ;;  %481 = vrot.lane.b32.xlu1 %v480_v7, %s764_s18 }
  0x3a   :  { %499 = vrot.lane.b32.xlu0 %v498_v19, %s765_s25  ;;  %517 = vrot.lane.b32.xlu1 %v516_v20, %s766_s26 }
  0x3e   :  { %535 = vrot.lane.b32.xlu0 %v534_v27, %s767_s0  ;;  %553 = vrot.lane.b32.xlu1 %v552_v28, %s768_s29 }
  0x42   :  { %571 = vrot.lane.b32.xlu0 %v570_v31, %s769_s30 }
  0x78   :  { %v32_v32 = vpop.permute.xlu0 %31   ;;  %v68_v33 = vpop.permute.xlu1 %67  }
  0x79   :  { %34 = vst.msk [vmem:[#allocation0] sm:$0xf] %vm33_vm4, %v32_v32   ;;  %vm321_vm4 = vcmask 523744  }
  0x7c   :  { %v50_v34 = vpop.permute.xlu0 %49   ;;  %v86_v35 = vpop.permute.xlu1 %85  }
  0x7d   :  { %52 = vst.msk [vmem:[#allocation0] sm:$0xf] %vm51_vm5, %v50_v34   ;;  %vm339_vm5 = vcmask 490944  }
  0x7e   :  { %70 = vst.msk [vmem:[#allocation0] sm:$0xf] %vm69_vm6, %v68_v33   ;;  %vm357_vm6 = vcmask 458144  }
  0x7f   :  { %88 = vst.msk [vmem:[#allocation0] sm:$0xf] %vm87_vm7, %v86_v35   ;;  %vm375_vm7 = vcmask 425344  }
  0x80   :  { %v104_v36 = vpop.permute.xlu0 %103   ;;  %v122_v37 = vpop.permute.xlu1 %121  }
  0x81   :  { %106 = vst.msk [vmem:[#allocation0] sm:$0xf] %vm105_vm8, %v104_v36   ;;  %vm393_vm8 = vcmask 392544  }
  0x82   :  { %124 = vst.msk [vmem:[#allocation0] sm:$0xf] %vm123_vm9, %v122_v37   ;;  %vm411_vm9 = vcmask 359744  }
  0x84   :  { %v140_v38 = vpop.permute.xlu0 %139   ;;  %v158_v39 = vpop.permute.xlu1 %157  }
  0x85   :  { %142 = vst.msk [vmem:[#allocation0] sm:$0xf] %vm141_vm10, %v140_v38   ;;  %vm429_vm10 = vcmask 326944  }
  0x86   :  { %160 = vst.msk [vmem:[#allocation0] sm:$0xf] %vm159_vm11, %v158_v39   ;;  %vm447_vm11 = vcmask 294144  }
  0x88   :  { %v176_v40 = vpop.permute.xlu0 %175   ;;  %v194_v41 = vpop.permute.xlu1 %193  }
  0x89   :  { %178 = vst.msk [vmem:[#allocation0] sm:$0xf] %vm177_vm12, %v176_v40   ;;  %vm465_vm12 = vcmask 261344  }
  0x8a   :  { %196 = vst.msk [vmem:[#allocation0] sm:$0xf] %vm195_vm13, %v194_v41   ;;  %vm483_vm13 = vcmask 228544  }
  0x8c   :  { %v212_v42 = vpop.permute.xlu0 %211   ;;  %v230_v43 = vpop.permute.xlu1 %229  }
  0x8d   :  { %214 = vst.msk [vmem:[#allocation0] sm:$0xf] %vm213_vm14, %v212_v42   ;;  %vm501_vm14 = vcmask 195744  }
  0x8e   :  { %232 = vst.msk [vmem:[#allocation0] sm:$0xf] %vm231_vm15, %v230_v43   ;;  %vm519_vm15 = vcmask 162944  }
  0x90   :  { %v248_v44 = vpop.permute.xlu0 %247   ;;  %v266_v45 = vpop.permute.xlu1 %265  }
  0x91   :  { %250 = vst.msk [vmem:[#allocation0] sm:$0xf] %vm249_vm0, %v248_v44   ;;  %vm537_vm0 = vcmask 130144  }
  0x92   :  { %268 = vst.msk [vmem:[#allocation0] sm:$0xf] %vm267_vm1, %v266_v45   ;;  %vm555_vm1 = vcmask 97344  }
  0x94   :  { %v284_v46 = vpop.permute.xlu0 %283   ;;  %v302_v47 = vpop.permute.xlu1 %301  }
  0x95   :  { %286 = vst.msk [vmem:[#allocation0] sm:$0xf] %vm285_vm2, %v284_v46   ;;  %vm573_vm2 = vcmask 64544  }
  0x96   :  { %304 = vst.msk [vmem:[#allocation0] sm:$0xf] %vm303_vm3, %v302_v47  }
  0x98   :  { %v320_v48 = vpop.permute.xlu0 %319   ;;  %v338_v49 = vpop.permute.xlu1 %337  }
  0x99   :  { %322 = vst.msk [vmem:[#allocation0] sm:$0xf] %vm321_vm4, %v320_v48  }
  0x9a   :  { %340 = vst.msk [vmem:[#allocation0] sm:$0xf] %vm339_vm5, %v338_v49  }
  0x9c   :  { %v356_v50 = vpop.permute.xlu0 %355   ;;  %v374_v51 = vpop.permute.xlu1 %373  }
  0x9d   :  { %358 = vst.msk [vmem:[#allocation0] sm:$0xf] %vm357_vm6, %v356_v50  }
  0x9e   :  { %376 = vst.msk [vmem:[#allocation0] sm:$0xf] %vm375_vm7, %v374_v51  }
  0xa0   :  { %v392_v52 = vpop.permute.xlu0 %391   ;;  %v410_v53 = vpop.permute.xlu1 %409  }
  0xa1   :  { %394 = vst.msk [vmem:[#allocation0] sm:$0xf] %vm393_vm8, %v392_v52  }
  0xa2   :  { %412 = vst.msk [vmem:[#allocation0] sm:$0xf] %vm411_vm9, %v410_v53  }
  0xa4   :  { %v428_v54 = vpop.permute.xlu0 %427   ;;  %v446_v55 = vpop.permute.xlu1 %445  }
  0xa5   :  { %430 = vst.msk [vmem:[#allocation0] sm:$0xf] %vm429_vm10, %v428_v54  }
  0xa6   :  { %448 = vst.msk [vmem:[#allocation0] sm:$0xf] %vm447_vm11, %v446_v55  }
  0xa8   :  { %v464_v56 = vpop.permute.xlu0 %463   ;;  %v482_v57 = vpop.permute.xlu1 %481  }
  0xa9   :  { %466 = vst.msk [vmem:[#allocation0] sm:$0xf] %vm465_vm12, %v464_v56  }
  0xaa   :  { %484 = vst.msk [vmem:[#allocation0] sm:$0xf] %vm483_vm13, %v482_v57  }
  0xac   :  { %v500_v58 = vpop.permute.xlu0 %499   ;;  %v518_v59 = vpop.permute.xlu1 %517  }
  0xad   :  { %502 = vst.msk [vmem:[#allocation0] sm:$0xf] %vm501_vm14, %v500_v58  }
  0xae   :  { %520 = vst.msk [vmem:[#allocation0] sm:$0xf] %vm519_vm15, %v518_v59  }
  0xb0   :  { %v536_v60 = vpop.permute.xlu0 %535   ;;  %v554_v61 = vpop.permute.xlu1 %553  }
  0xb1   :  { %538 = vst.msk [vmem:[#allocation0] sm:$0xf] %vm537_vm0, %v536_v60  }
  0xb2   :  { %556 = vst.msk [vmem:[#allocation0] sm:$0xf] %vm555_vm1, %v554_v61  }
  0xb4   :  { %v572_v62 = vpop.permute.xlu0 %571  }
  0xb5   :  { %574 = vst.msk [vmem:[#allocation0] sm:$0xf] %vm573_vm2, %v572_v62  }
  0xbc   :  { %v578_v63 = vld [vmem:[#allocation0] sm:$0xf] }
  0xbd   :  { %580 = vst [vmem:[%s1265_s1] sm:$0xf] %v578_v63 }

// kernel: residual5_nchw.1
= control target key start
LH: loop header
LB: loop body
LE: loop exit
PB: predicated region body
PF: predicated region fallthrough
CT: control target
= control target key end

     0   :  { %v2262_v3 = vmov 0.0|0.0   ;;  %v40_v26 = vlaneseq  ;;  %v2263_v46 = vmov 0.0   ;;  %vm2264_vm4 = vmmov 0   ;;  %s2855_s1 = inlined_call_operand.vmem [shape: f32[6,128,128], index: 1, kind: input, shape index: {}]   ;;  %s2856_s0 = inlined_call_operand.vmem [shape: f32[16,128], index: 0, kind: input, shape index: {}]   ;;  %s2857_s3 = inlined_call_operand.vmem [shape: f32[128,4], index: 3, kind: input, shape index: {}]   ;;  %s2858_s4 = inlined_call_operand.vmem [shape: f32[4,128], index: 4, kind: input, shape index: {}]   ;;  %s2859_s2 = inlined_call_operand.vmem [shape: f32[4,4], index: 2, kind: input, shape index: {}]   ;;  %s2860_s5 = inlined_call_operand.vmem [shape: f32[16,128], index: 5, kind: output, shape index: {}]  }
   0x1   :  { %v1317_v0 = vld [vmem:[%s2855_s1 + $0x80] sm:$0xff]  ;;  %v1318_v1 = vld [vmem:[%s2855_s1 + $0x88] sm:$0xff]  ;;  %v1319_v2 = vld [vmem:[%s2855_s1 + $0x90] sm:$0xff]  ;;  %2055 = vmatprep.subr.bf16.mxu1 %v2262_v3  ;;  %1726 = vmatprep.mubr.msk.f32.mxu1 %vm2264_vm4, %v2263_v46  ;;  %vm428_vm5 = vcmask 1043456   ;;  %vm424_vm6 = vcmask 31744   ;;  %vm591_vm7 = vcmask 1040384  }
   0x2   :  { %v1959_v4 = vpack.c.bf16 %v1318_v1, %v1317_v0  ;;  %v1320_v5 = vld [vmem:[%s2855_s1 + $0x98] sm:$0xff]  ;;  %v1321_v7 = vld [vmem:[%s2855_s1 + $0xa0] sm:$0xff]  ;;  %v1322_v8 = vld [vmem:[%s2855_s1 + $0xa8] sm:$0xff]  ;;  %v2374_v34 = vshrl.u32 %v40_v26, 7 }
   0x3   :  { %v1963_v6 = vpack.c.bf16 %v1320_v5, %v1319_v2  ;;  %v1967_v9 = vpack.c.bf16 %v1322_v8, %v1321_v7  ;;  %v2317_v10 = vld [vmem:[%s2856_s0] sm:$0xff]  ;;  %v1323_v11 = vld [vmem:[%s2855_s1 + $0xb0] sm:$0xff]  ;;  %v1324_v12 = vld [vmem:[%s2855_s1 + $0xb8] sm:$0xff] }
   0x4   :  { %1960 = vmatprep.subr.bf16.mxu0 %v1959_v4  ;;  %1621 = vmatprep.mubr.f32.mxu0 %v2317_v10  ;;  %v1971_v13 = vpack.c.bf16 %v1324_v12, %v1323_v11  ;;  %v1325_v14 = vld [vmem:[%s2855_s1 + $0xc0] sm:$0xff]  ;;  %v1326_v15 = vld [vmem:[%s2855_s1 + $0xc8] sm:$0xff]  ;;  %v1327_v17 = vld [vmem:[%s2855_s1 + $0xd0] sm:$0xff]  ;;  %v55_v38 = vrot.slane %v2317_v10, 7  ;;  %vm43_vm0 = vcmp.ne.s32.totalorder %v2374_v34, 0  ;;  %vm57_vm1 = vcmp.lt.s32.totalorder %v2374_v34, 1 }
   0x5   :  { %1962 = vmatpush3.bf16.msra.mxu0 %v1959_v4  ;;  %v1975_v16 = vpack.c.bf16 %v1326_v15, %v1325_v14  ;;  %v1328_v18 = vld [vmem:[%s2855_s1 + $0xd8] sm:$0xff]  ;;  %v22_v19 = vld [vmem:[%s2857_s3] sm:$0xff]  ;;  %v23_v21 = vld [vmem:[%s2857_s3 + $0x8] sm:$0xff]  ;;  %v2405_v47 = vsel %vm43_vm0, 1.0, %v2263_v46  ;;  %v62_v12 = vrot.slane %v2317_v10, 1  ;;  %vm64_vm2 = vcmp.lt.s32.totalorder %v2374_v34, 7 }
   0x6   :  { %1964 = vmatprep.subr.bf16.mxu0 %v1963_v6  ;;  %v1979_v20 = vpack.c.bf16 %v1328_v18, %v1327_v17  ;;  %v24_v22 = vld [vmem:[%s2857_s3 + $0x10] sm:$0xff]  ;;  %v25_v23 = vld [vmem:[%s2857_s3 + $0x18] sm:$0xff]  ;;  %v1329_v24 = vld [vmem:[%s2855_s1 + $0xe0] sm:$0xff]  ;;  %v2356_v27 = vpack.c.bf16 %v23_v21, %v22_v19 }
   0x7   :  { %v1330_v25 = vld [vmem:[%s2855_s1 + $0xe8] sm:$0xff]  ;;  %v2359_v28 = vpack.c.bf16 %v25_v23, %v24_v22  ;;  %v26_v30 = vld [vmem:[%s2857_s3 + $0x20] sm:$0xff]  ;;  %v1331_v32 = vld [vmem:[%s2855_s1 + $0xf0] sm:$0xff] }
   0x8   :  { %2057 = vmatpush3.bf16.msra.mxu1 %v2356_v27  ;;  %v1983_v29 = vpack.c.bf16 %v1330_v25, %v1329_v24  ;;  %v27_v31 = vld [vmem:[%s2857_s3 + $0x28] sm:$0xff]  ;;  %v1332_v33 = vld [vmem:[%s2855_s1 + $0xf8] sm:$0xff]  ;;  %v28_v40 = vld [vmem:[%s2857_s3 + $0x30] sm:$0xff] }
   0x9   :  { %1966 = vmatpush3.bf16.msra.mxu0 %v1963_v6  ;;  %2058 = vmatprep.subr.bf16.mxu1 %v2262_v3  ;;  %v2379_v35 = vld [vmem:[%s2856_s0 + $0x8] sm:$0xff]  ;;  %v2382_v36 = vpack.c.bf16 %v27_v31, %v26_v30  ;;  %v1987_v37 = vpack.c.bf16 %v1332_v33, %v1331_v32  ;;  %v29_v41 = vld [vmem:[%s2857_s3 + $0x38] sm:$0xff]  ;;  %v69_v42 = vld [vmem:[%s2855_s1] sm:$0xff] }
   0xa   :  { %1968 = vmatprep.subr.bf16.mxu0 %v1967_v9  ;;  %v56_v39 = vrot.slane %v2379_v35, 7  ;;  %v70_v43 = vld [vmem:[%s2855_s1 + $0x8] sm:$0xff]  ;;  %v2402_v44 = vpack.c.bf16 %v29_v41, %v28_v40  ;;  %v71_v49 = vld [vmem:[%s2855_s1 + $0x10] sm:$0xff]  ;;  %v72_v50 = vld [vmem:[%s2855_s1 + $0x18] sm:$0xff] }
   0xb   :  { %v1991_v45 = vpack.c.bf16 %v70_v43, %v69_v42  ;;  %v1995_v52 = vpack.c.bf16 %v72_v50, %v71_v49  ;;  %v73_v53 = vld [vmem:[%s2855_s1 + $0x20] sm:$0xff]  ;;  %v74_v54 = vld [vmem:[%s2855_s1 + $0x28] sm:$0xff]  ;;  %v75_v56 = vld [vmem:[%s2855_s1 + $0x30] sm:$0xff] }
   0xc   :  { %2060 = vmatpush3.bf16.msra.mxu1 %v2359_v28  ;;  %v59_v48 = vsel %vm57_vm1, %v56_v39, %v55_v38  ;;  %v1999_v55 = vpack.c.bf16 %v74_v54, %v73_v53  ;;  %v76_v57 = vld [vmem:[%s2855_s1 + $0x38] sm:$0xff]  ;;  %v77_v59 = vld [vmem:[%s2855_s1 + $0x40] sm:$0xff]  ;;  %v78_v60 = vld [vmem:[%s2855_s1 + $0x48] sm:$0xff] }
   0xd   :  { %1970 = vmatpush3.bf16.msra.mxu0 %v1967_v9  ;;  %2061 = vmatprep.subr.bf16.mxu1 %v2262_v3  ;;  %v60_v51 = vmul.f32 %v2405_v47, %v59_v48  ;;  %v2003_v58 = vpack.c.bf16 %v76_v57, %v75_v56  ;;  %v2007_v61 = vpack.c.bf16 %v78_v60, %v77_v59  ;;  %v79_v62 = vld [vmem:[%s2855_s1 + $0x50] sm:$0xff]  ;;  %v80_v63 = vld [vmem:[%s2855_s1 + $0x58] sm:$0xff]  ;;  %v81_v1 = vld [vmem:[%s2855_s1 + $0x60] sm:$0xff] }
   0xe   :  { %1972 = vmatprep.subr.bf16.mxu0 %v1971_v13  ;;  %v2011_v0 = vpack.c.bf16 %v80_v63, %v79_v62  ;;  %v82_v2 = vld [vmem:[%s2855_s1 + $0x68] sm:$0xff]  ;;  %v83_v5 = vld [vmem:[%s2855_s1 + $0x70] sm:$0xff]  ;;  %v84_v6 = vld [vmem:[%s2855_s1 + $0x78] sm:$0xff] }
   0xf   :  { %v2015_v4 = vpack.c.bf16 %v82_v2, %v81_v1  ;;  %v2019_v7 = vpack.c.bf16 %v84_v6, %v83_v5  ;;  %v1333_v8 = vld [vmem:[%s2855_s1 + $0x100] sm:$0xff]  ;;  %v1334_v9 = vld [vmem:[%s2855_s1 + $0x108] sm:$0xff]  ;;  %v1335_v14 = vld [vmem:[%s2855_s1 + $0x110] sm:$0xff] }
  0x10   :  { %2063 = vmatpush3.bf16.msra.mxu1 %v2382_v36  ;;  %v2023_v11 = vpack.c.bf16 %v1334_v9, %v1333_v8  ;;  %v1336_v15 = vld [vmem:[%s2855_s1 + $0x118] sm:$0xff]  ;;  %v1337_v19 = vld [vmem:[%s2855_s1 + $0x120] sm:$0xff]  ;;  %v1339_v22 = vld [vmem:[%s2855_s1 + $0x130] sm:$0xff] }
  0x11   :  { %1974 = vmatpush3.bf16.msra.mxu0 %v1971_v13  ;;  %2064 = vmatprep.subr.bf16.mxu1 %v2262_v3  ;;  %v63_v13 = vrot.slane %v2379_v35, 1  ;;  %v2027_v17 = vpack.c.bf16 %v1336_v15, %v1335_v14  ;;  %v1340_v23 = vld [vmem:[%s2855_s1 + $0x138] sm:$0xff]  ;;  %v1341_v25 = vld [vmem:[%s2855_s1 + $0x140] sm:$0xff]  ;;  %v1342_v26 = vld [vmem:[%s2855_s1 + $0x148] sm:$0xff] }
  0x12   :  { %1976 = vmatprep.subr.bf16.mxu0 %v1975_v16  ;;  %v2035_v24 = vpack.c.bf16 %v1340_v23, %v1339_v22  ;;  %v1343_v30 = vld [vmem:[%s2855_s1 + $0x150] sm:$0xff]  ;;  %v1344_v31 = vld [vmem:[%s2855_s1 + $0x158] sm:$0xff]  ;;  %v1345_v33 = vld [vmem:[%s2855_s1 + $0x160] sm:$0xff] }
  0x13   :  { %v65_v18 = vsel %vm64_vm2, %v62_v12, %v63_v13  ;;  %v2043_v32 = vpack.c.bf16 %v1344_v31, %v1343_v30  ;;  %v1347_v40 = vld [vmem:[%s2855_s1 + $0x170] sm:$0xff]  ;;  %v1348_v41 = vld [vmem:[%s2855_s1 + $0x178] sm:$0xff]  ;;  %v30_v49 = vld [vmem:[%s2857_s3 + $0x40] sm:$0xff] }
  0x14   :  { %2066 = vmatpush3.bf16.msra.mxu1 %v2402_v44  ;;  %v2051_v42 = vpack.c.bf16 %v1348_v41, %v1347_v40  ;;  %v31_v50 = vld [vmem:[%s2857_s3 + $0x48] sm:$0xff]  ;;  %v33_v53 = vld [vmem:[%s2857_s3 + $0x58] sm:$0xff]  ;;  %v1371_v40 = vld [vmem:[%s2855_s1 + $0x210] sm:$0xff] }
  0x15   :  { %1978 = vmatpush3.bf16.msra.mxu0 %v1975_v16  ;;  %2067 = vmatprep.subr.bf16.mxu1 %v2262_v3  ;;  %v58_v16 = vsel %vm57_vm1, %v55_v38, %v56_v39  ;;  %v42_v39 = vadd.s32 8, %v2374_v34  ;;  %v35_v56 = vld [vmem:[%s2857_s3 + $0x68] sm:$0xff]  ;;  %v37_v59 = vld [vmem:[%s2857_s3 + $0x78] sm:$0xff] }
  0x16   :  { %1980 = vmatprep.subr.bf16.mxu0 %v1979_v20  ;;  %v1370_v30 = vld [vmem:[%s2855_s1 + $0x208] sm:$0xff]  ;;  %v1372_v41 = vld [vmem:[%s2855_s1 + $0x218] sm:$0xff] }
  0x17   :  { %vm50_vm3 = vcmp.ne.s32.totalorder %v42_v39, 15  ;;  %v2641_v39 = vld [vmem:[%s2859_s2] sm:$0xf] }
  0x18   :  { %v2521_v43 = vsel %vm50_vm3, 1.0, %v2263_v46 }
  0x19   :  { %1982 = vmatpush3.bf16.msra.mxu0 %v1979_v20  ;;  %v1338_v20 = vld [vmem:[%s2855_s1 + $0x128] sm:$0xff] }
  0x1a   :  { %1984 = vmatprep.subr.bf16.mxu0 %v1983_v29  ;;  %v2031_v21 = vpack.c.bf16 %v1338_v20, %v1337_v19 }
  0x1d   :  { %1986 = vmatpush3.bf16.msra.mxu0 %v1983_v29  ;;  %v2039_v29 = vpack.c.bf16 %v1342_v26, %v1341_v25 }
  0x1e   :  { %1988 = vmatprep.subr.bf16.mxu0 %v1987_v37 }
  0x21   :  { %1990 = vmatpush3.bf16.msra.mxu0 %v1987_v37  ;;  %v1346_v37 = vld [vmem:[%s2855_s1 + $0x168] sm:$0xff] }
  0x22   :  { %1992 = vmatprep.subr.bf16.mxu0 %v1991_v45  ;;  %v2047_v38 = vpack.c.bf16 %v1346_v37, %v1345_v33 }
  0x24   :  { %1622 = vmatmul.mubr.f32.vlgmr.msra.gmra.mrb[0].mxu0 %v2379_v35 }
  0x25   :  { %1994 = vmatpush3.bf16.msra.mxu0 %v1991_v45  ;;  %1656 = vmatprep.mubr.f32.mxu0 %v60_v51  ;;  %v66_v45 = vsel %vm64_vm2, %v63_v13, %v62_v12  ;;  %v2541_v51 = vpack.c.bf16 %v31_v50, %v30_v49  ;;  %v2617_v12 = vsub.s32 0, %v2374_v34  ;;  %v1373_v50 = vld [vmem:[%s2855_s1 + $0x220] sm:$0xff] }
  0x26   :  { %1996 = vmatprep.subr.bf16.mxu0 %v1995_v52  ;;  %v68_v48 = vmul.f32 %v2521_v43, %v66_v45 }
  0x27   :  { %2069 = vmatpush3.bf16.msra.mxu1 %v2541_v51 }
  0x28   :  { %2070 = vmatprep.subr.bf16.mxu1 %v2262_v3 }
  0x29   :  { %1998 = vmatpush3.bf16.msra.mxu0 %v1995_v52  ;;  %v32_v52 = vld [vmem:[%s2857_s3 + $0x50] sm:$0xff] }
  0x2a   :  { %2000 = vmatprep.subr.bf16.mxu0 %v1999_v55  ;;  %v2553_v54 = vpack.c.bf16 %v33_v53, %v32_v52  ;;  %v1374_v52 = vld [vmem:[%s2855_s1 + $0x228] sm:$0xff] }
  0x2b   :  { %v2111_v53 = vpack.c.bf16 %v1374_v52, %v1373_v50  ;;  %v1363_v52 = vld [vmem:[%s2855_s1 + $0x1d0] sm:$0xff] }
  0x2c   :  { %2072 = vmatpush3.bf16.msra.mxu1 %v2553_v54 }
  0x2d   :  { %2002 = vmatpush3.bf16.msra.mxu0 %v1999_v55  ;;  %2073 = vmatprep.subr.bf16.mxu1 %v2262_v3  ;;  %v34_v55 = vld [vmem:[%s2857_s3 + $0x60] sm:$0xff] }
  0x2e   :  { %2004 = vmatprep.subr.bf16.mxu0 %v2003_v58  ;;  %v2565_v57 = vpack.c.bf16 %v35_v56, %v34_v55  ;;  %v1375_v55 = vld [vmem:[%s2855_s1 + $0x230] sm:$0xff]  ;;  %v1376_v56 = vld [vmem:[%s2855_s1 + $0x238] sm:$0xff] }
  0x30   :  { %2075 = vmatpush3.bf16.msra.mxu1 %v2565_v57 }
  0x31   :  { %2006 = vmatpush3.bf16.msra.mxu0 %v2003_v58  ;;  %2076 = vmatprep.subr.bf16.mxu1 %v2262_v3  ;;  %v36_v58 = vld [vmem:[%s2857_s3 + $0x70] sm:$0xff] }
  0x32   :  { %2008 = vmatprep.subr.bf16.mxu0 %v2007_v61  ;;  %v2577_v60 = vpack.c.bf16 %v37_v59, %v36_v58  ;;  %v2115_v58 = vpack.c.bf16 %v1376_v56, %v1375_v55  ;;  %v1377_v59 = vld [vmem:[%s2855_s1 + $0x240] sm:$0xff] }
  0x33   :  { %v1365_v56 = vld [vmem:[%s2855_s1 + $0x1e0] sm:$0xff] }
  0x34   :  { %2078 = vmatpush3.bf16.msra.mxu1 %v2577_v60 }
  0x35   :  { %2010 = vmatpush3.bf16.msra.mxu0 %v2007_v61  ;;  %1729 = vmatprep.subr.mxu1 %v2263_v46 }
  0x36   :  { %2012 = vmatprep.subr.bf16.mxu0 %v2011_v0 }
  0x39   :  { %2014 = vmatpush3.bf16.msra.mxu0 %v2011_v0 }
  0x3a   :  { %2016 = vmatprep.subr.bf16.mxu0 %v2015_v4 }
  0x3d   :  { %2018 = vmatpush3.bf16.msra.mxu0 %v2015_v4 }
  0x3e   :  { %2020 = vmatprep.subr.bf16.mxu0 %v2019_v7 }
  0x41   :  { %2022 = vmatpush3.bf16.msra.mxu0 %v2019_v7  ;;  %v2590_v7 = vld [vmem:[%s2858_s4] sm:$0xf] }
  0x42   :  { %2024 = vmatprep.subr.bf16.mxu0 %v2023_v11 }
  0x44   :  { %1657 = vmatmul.mubr.f32.vlgmr.msra.gmra.mrb[0].mxu0 %v58_v16 }
  0x45   :  { %2026 = vmatpush3.bf16.msra.mxu0 %v2023_v11  ;;  %1691 = vmatprep.mubr.f32.mxu0 %v65_v18 }
  0x46   :  { %2028 = vmatprep.subr.bf16.mxu0 %v2027_v17 }
  0x49   :  { %2030 = vmatpush3.bf16.msra.mxu0 %v2027_v17 }
  0x4a   :  { %2032 = vmatprep.subr.bf16.mxu0 %v2031_v21 }
  0x4d   :  { %2034 = vmatpush3.bf16.msra.mxu0 %v2031_v21 }
  0x4e   :  { %2036 = vmatprep.subr.bf16.mxu0 %v2035_v24 }
  0x51   :  { %2038 = vmatpush3.bf16.msra.mxu0 %v2035_v24 }
  0x52   :  { %2040 = vmatprep.subr.bf16.mxu0 %v2039_v29 }
  0x55   :  { %2042 = vmatpush3.bf16.msra.mxu0 %v2039_v29  ;;  %v1369_v29 = vld [vmem:[%s2855_s1 + $0x200] sm:$0xff] }
  0x56   :  { %2044 = vmatprep.subr.bf16.mxu0 %v2043_v32  ;;  %v2103_v31 = vpack.c.bf16 %v1370_v30, %v1369_v29  ;;  %v1356_v29 = vld [vmem:[%s2855_s1 + $0x198] sm:$0xff] }
  0x59   :  { %2046 = vmatpush3.bf16.msra.mxu0 %v2043_v32 }
  0x5a   :  { %2048 = vmatprep.subr.bf16.mxu0 %v2047_v38 }
  0x5d   :  { %2050 = vmatpush3.bf16.msra.mxu0 %v2047_v38 }
  0x5e   :  { %2052 = vmatprep.subr.bf16.mxu0 %v2051_v42 }
  0x61   :  { %2054 = vmatpush3.bf16.msra.mxu0 %v2051_v42 }
  0x62   :  { %2199 = vmatprep.subr.bf16.mxu0 %v2262_v3 }
  0x64   :  { %1692 = vmatmul.mubr.f32.vlgmr.msra.gmra.mrb[0].mxu0 %v68_v48  ;;  %v2107_v48 = vpack.c.bf16 %v1372_v41, %v1371_v40 }
  0x65   :  { %2201 = vmatpush3.bf16.msra.mxu0 %v2356_v27  ;;  %1911 = vmatprep.mubr.msk.f32.mxu0 %vm2264_vm4, %v2263_v46 }
  0x66   :  { %2202 = vmatprep.subr.bf16.mxu0 %v2262_v3 }
  0x69   :  { %2204 = vmatpush3.bf16.msra.mxu0 %v2359_v28 }
  0x6a   :  { %2205 = vmatprep.subr.bf16.mxu0 %v2262_v3 }
  0x6d   :  { %2207 = vmatpush3.bf16.msra.mxu0 %v2382_v36 }
  0x6e   :  { %2208 = vmatprep.subr.bf16.mxu0 %v2262_v3 }
  0x71   :  { %2210 = vmatpush3.bf16.msra.mxu0 %v2402_v44 }
  0x72   :  { %2211 = vmatprep.subr.bf16.mxu0 %v2262_v3 }
  0x75   :  { %2213 = vmatpush3.bf16.msra.mxu0 %v2541_v51 }
  0x76   :  { %2214 = vmatprep.subr.bf16.mxu0 %v2262_v3 }
  0x79   :  { %2216 = vmatpush3.bf16.msra.mxu0 %v2553_v54 }
  0x7a   :  { %2217 = vmatprep.subr.bf16.mxu0 %v2262_v3 }
  0x7d   :  { %2219 = vmatpush3.bf16.msra.mxu0 %v2565_v57 }
  0x7e   :  { %2220 = vmatprep.subr.bf16.mxu0 %v2262_v3 }
  0x81   :  { %2222 = vmatpush3.bf16.msra.mxu0 %v2577_v60 }
  0x82   :  { %1914 = vmatprep.subr.mxu0 %v2263_v46 }
 0x137   :  { %v1693_v61 = vpop.f32.mrb[0].mxu0 }
 0x138   :  { %v335_v62 = vpop.f32.mrb[1].mxu0 }
 0x139   :  { %v346_v63 = vadd.f32 %v1693_v61, %v335_v62 }
 0x13b   :  { %v347_v0 = vrot.slane %v346_v63, 4 }
 0x13d   :  { %v348_v1 = vadd.f32 %v347_v0, %v346_v63  ;;  %v1379_v63 = vld [vmem:[%s2855_s1 + $0x250] sm:$0xff]  ;;  %v1380_v0 = vld [vmem:[%s2855_s1 + $0x258] sm:$0xff] }
 0x13f   :  { %v349_v2 = vrot.slane %v348_v1, 2 }
 0x141   :  { %v350_v4 = vadd.f32 %v349_v2, %v348_v1  ;;  %v2123_v1 = vpack.c.bf16 %v1380_v0, %v1379_v63  ;;  %v1381_v2 = vld [vmem:[%s2855_s1 + $0x260] sm:$0xff] }
 0x142   :  { %v1385_v0 = vld [vmem:[%s2855_s1 + $0x280] sm:$0xff] }
 0x143   :  { %v351_v5 = vrot.slane %v350_v4, 1 }
 0x145   :  { %v352_v6 = vadd.f32 %v351_v5, %v350_v4  ;;  %v1382_v4 = vld [vmem:[%s2855_s1 + $0x268] sm:$0xff] }
 0x146   :  { %v2127_v5 = vpack.c.bf16 %v1382_v4, %v1381_v2  ;;  %v1387_v4 = vld [vmem:[%s2855_s1 + $0x290] sm:$0xff] }
 0x147   :  { %1727 = vmatmul.mubr.f32.vlgmr.msra.gmra.mrb[0].mxu1 %v352_v6  ;;  %v1383_v6 = vld [vmem:[%s2855_s1 + $0x270] sm:$0xff] }
 0x148   :  { %1730 = vmatpush3.msk.msra.mxu1 %vm428_vm5, %v2590_v7  ;;  %1731 = vmatprep.mubr.msk.f32.mxu1 %vm2264_vm4, %v2263_v46 }
 0x149   :  { %2079 = vmatprep.subr.bf16.mxu1 %v2262_v3 }
 0x21a   :  { %v419_v8 = vpop.f32.mrb[0].mxu1 }
 0x21b   :  { %v423_v9 = vmul.f32 0.001953125, %v419_v8  ;;  %v1728_v11 = vpop.f32.mrb[1].mxu1  ;;  %v1384_v8 = vld [vmem:[%s2855_s1 + $0x278] sm:$0xff] }
 0x21c   :  { %v1353_v11 = vld [vmem:[%s2855_s1 + $0x180] sm:$0xff] }
 0x21d   :  { %1732 = vmatmul.mubr.msk.f32.vlgmr.msra.gmra.mrb[2].mxu1 %vm424_vm6, %v423_v9  ;;  %v2131_v9 = vpack.c.bf16 %v1384_v8, %v1383_v6 }
 0x21e   :  { %2081 = vmatpush3.bf16.msra.mxu1 %v2356_v27  ;;  %1766 = vmatprep.mubr.msk.f32.mxu1 %vm2264_vm4, %v2263_v46 }
 0x21f   :  { %2082 = vmatprep.subr.bf16.mxu1 %v2262_v3 }
 0x222   :  { %2084 = vmatpush3.bf16.msra.mxu1 %v2359_v28 }
 0x223   :  { %2085 = vmatprep.subr.bf16.mxu1 %v2262_v3 }
 0x226   :  { %2087 = vmatpush3.bf16.msra.mxu1 %v2382_v36 }
 0x227   :  { %2088 = vmatprep.subr.bf16.mxu1 %v2262_v3 }
 0x22a   :  { %2090 = vmatpush3.bf16.msra.mxu1 %v2402_v44 }
 0x22b   :  { %2091 = vmatprep.subr.bf16.mxu1 %v2262_v3 }
 0x22e   :  { %2093 = vmatpush3.bf16.msra.mxu1 %v2541_v51 }
 0x22f   :  { %2094 = vmatprep.subr.bf16.mxu1 %v2262_v3 }
 0x232   :  { %2096 = vmatpush3.bf16.msra.mxu1 %v2553_v54 }
 0x233   :  { %2097 = vmatprep.subr.bf16.mxu1 %v2262_v3 }
 0x236   :  { %2099 = vmatpush3.bf16.msra.mxu1 %v2565_v57 }
 0x237   :  { %2100 = vmatprep.subr.bf16.mxu1 %v2262_v3 }
 0x23a   :  { %2102 = vmatpush3.bf16.msra.mxu1 %v2577_v60 }
 0x23b   :  { %1769 = vmatprep.subr.mxu1 %v2263_v46 }
 0x2f0   :  { %v498_v13 = vpop.f32.mrb[2].mxu1 }
 0x2f1   :  { %v505_v14 = vrot.slane %v498_v13, %v2617_v12  ;;  %v1733_v15 = vpop.f32.mrb[3].mxu1  ;;  %v1354_v13 = vld [vmem:[%s2855_s1 + $0x188] sm:$0xff] }
 0x2f2   :  { %v674_v15 = vsub.s32 1, %v2374_v34 }
 0x2f3   :  { %v2620_v16 = vsub.f32 %v335_v62, %v505_v14  ;;  %v2622_v17 = vsub.f32 %v1693_v61, %v505_v14  ;;  %v1378_v61 = vld [vmem:[%s2855_s1 + $0x248] sm:$0xff]  ;;  %v2135_v14 = vpack.c.bf16 %v1354_v13, %v1353_v11  ;;  %v1389_v13 = vld [vmem:[%s2855_s1 + $0x2a0] sm:$0xff] }
 0x2f4   :  { %v2119_v62 = vpack.c.bf16 %v1378_v61, %v1377_v59  ;;  %v1367_v61 = vld [vmem:[%s2855_s1 + $0x1f0] sm:$0xff] }
 0x2f5   :  { %v508_v18 = vmul.f32 %v2620_v16, %v2620_v16  ;;  %v509_v19 = vmul.f32 %v2622_v17, %v2622_v17 }
 0x2f7   :  { %v510_v20 = vadd.f32 %v509_v19, %v508_v18 }
 0x2f9   :  { %v511_v21 = vrot.slane %v510_v20, 4 }
 0x2fb   :  { %v512_v22 = vadd.f32 %v511_v21, %v510_v20 }
 0x2fd   :  { %v513_v23 = vrot.slane %v512_v22, 2 }
 0x2ff   :  { %v514_v24 = vadd.f32 %v513_v23, %v512_v22 }
 0x301   :  { %v515_v25 = vrot.slane %v514_v24, 1 }
 0x303   :  { %v516_v26 = vadd.f32 %v515_v25, %v514_v24 }
 0x305   :  { %1767 = vmatmul.mubr.f32.vlgmr.msra.gmra.mrb[4].mxu1 %v516_v26  ;;  %v1355_v26 = vld [vmem:[%s2855_s1 + $0x190] sm:$0xff] }
 0x306   :  { %1770 = vmatpush3.msk.msra.mxu1 %vm428_vm5, %v2590_v7  ;;  %1771 = vmatprep.mubr.msk.f32.mxu1 %vm2264_vm4, %v2263_v46 }
 0x307   :  { %2104 = vmatprep.subr.bf16.mxu1 %v2103_v31 }
 0x3d8   :  { %v583_v32 = vpop.f32.mrb[4].mxu1 }
 0x3d9   :  { %v587_v33 = vmul.f32 0.001953125, %v583_v32  ;;  %v1768_v37 = vpop.f32.mrb[5].mxu1 }
 0x3da   :  { %v1358_v37 = vld [vmem:[%s2855_s1 + $0x1a8] sm:$0xff] }
 0x3db   :  { %v588_v38 = vadd.f32 1e-05, %v587_v33  ;;  %v1357_v33 = vld [vmem:[%s2855_s1 + $0x1a0] sm:$0xff] }
 0x3dc   :  { %v2143_v41 = vpack.c.bf16 %v1358_v37, %v1357_v33  ;;  %v1400_v33 = vld [vmem:[%s2855_s1 + $0x2f8] sm:$0xff] }
 0x3dd   :  { %2258 = vrsqrt.f32 %v588_v38 }
 0x3e7   :  { %v2259_v42 = vpop.eup %2258 }
 0x3e8   :  { %v590_v45 = vmul.f32 %v2259_v42, %v2641_v39  ;;  %v1359_v42 = vld [vmem:[%s2855_s1 + $0x1b0] sm:$0xff] }
 0x3ea   :  { %v592_v49 = vsel %vm591_vm7, %v590_v45, %v2641_v39  ;;  %v1360_v45 = vld [vmem:[%s2855_s1 + $0x1b8] sm:$0xff] }
 0x3eb   :  { %1772 = vmatmul.mubr.msk.f32.vlgmr.msra.gmra.mrb[6].mxu1 %vm424_vm6, %v592_v49  ;;  %v1361_v49 = vld [vmem:[%s2855_s1 + $0x1c0] sm:$0xff] }
 0x3ec   :  { %2106 = vmatpush3.bf16.msra.mxu1 %v2103_v31 }
 0x3ed   :  { %2108 = vmatprep.subr.bf16.mxu1 %v2107_v48 }
 0x3f0   :  { %2110 = vmatpush3.bf16.msra.mxu1 %v2107_v48  ;;  %v2147_v48 = vpack.c.bf16 %v1360_v45, %v1359_v42 }
 0x3f1   :  { %2112 = vmatprep.subr.bf16.mxu1 %v2111_v53 }
 0x3f4   :  { %2114 = vmatpush3.bf16.msra.mxu1 %v2111_v53  ;;  %v1364_v53 = vld [vmem:[%s2855_s1 + $0x1d8] sm:$0xff] }
 0x3f5   :  { %2116 = vmatprep.subr.bf16.mxu1 %v2115_v58  ;;  %v2155_v55 = vpack.c.bf16 %v1364_v53, %v1363_v52 }
 0x3f8   :  { %2118 = vmatpush3.bf16.msra.mxu1 %v2115_v58  ;;  %v1366_v58 = vld [vmem:[%s2855_s1 + $0x1e8] sm:$0xff] }
 0x3f9   :  { %2120 = vmatprep.subr.bf16.mxu1 %v2119_v62  ;;  %v2159_v59 = vpack.c.bf16 %v1366_v58, %v1365_v56 }
 0x3fc   :  { %2122 = vmatpush3.bf16.msra.mxu1 %v2119_v62  ;;  %v1368_v62 = vld [vmem:[%s2855_s1 + $0x1f8] sm:$0xff] }
 0x3fd   :  { %2124 = vmatprep.subr.bf16.mxu1 %v2123_v1  ;;  %v2163_v63 = vpack.c.bf16 %v1368_v62, %v1367_v61 }
 0x400   :  { %2126 = vmatpush3.bf16.msra.mxu1 %v2123_v1  ;;  %v1386_v1 = vld [vmem:[%s2855_s1 + $0x288] sm:$0xff] }
 0x401   :  { %2128 = vmatprep.subr.bf16.mxu1 %v2127_v5  ;;  %v2167_v2 = vpack.c.bf16 %v1386_v1, %v1385_v0 }
 0x404   :  { %2130 = vmatpush3.bf16.msra.mxu1 %v2127_v5  ;;  %v1388_v5 = vld [vmem:[%s2855_s1 + $0x298] sm:$0xff] }
 0x405   :  { %2132 = vmatprep.subr.bf16.mxu1 %v2131_v9 }
 0x408   :  { %2134 = vmatpush3.bf16.msra.mxu1 %v2131_v9  ;;  %v2171_v9 = vpack.c.bf16 %v1388_v5, %v1387_v4 }
 0x409   :  { %2136 = vmatprep.subr.bf16.mxu1 %v2135_v14 }
 0x4be   :  { %v662_v18 = vpop.f32.mrb[6].mxu1 }
 0x4bf   :  { %v669_v19 = vrot.slane %v662_v18, %v2617_v12  ;;  %v1773_v20 = vpop.f32.mrb[7].mxu1  ;;  %v675_v23 = vrot.slane %v662_v18, %v674_v15 }
 0x4c0   :  { %v1391_v20 = vld [vmem:[%s2855_s1 + $0x2b0] sm:$0xff] }
 0x4c1   :  { %v670_v21 = vmul.f32 %v669_v19, %v2620_v16  ;;  %v671_v22 = vmul.f32 %v669_v19, %v2622_v17  ;;  %v2139_v16 = vpack.c.bf16 %v1356_v29, %v1355_v26  ;;  %v1395_v26 = vld [vmem:[%s2855_s1 + $0x2d0] sm:$0xff]  ;;  %v1396_v29 = vld [vmem:[%s2855_s1 + $0x2d8] sm:$0xff] }
 0x4c3   :  { %v676_v24 = vadd.f32 %v675_v23, %v670_v21  ;;  %v677_v25 = vadd.f32 %v675_v23, %v671_v22  ;;  %v1392_v21 = vld [vmem:[%s2855_s1 + $0x2b8] sm:$0xff]  ;;  %v1393_v23 = vld [vmem:[%s2855_s1 + $0x2c0] sm:$0xff] }
 0x4c4   :  { %v2179_v22 = vpack.c.bf16 %v1392_v21, %v1391_v20 }
 0x4c5   :  { %v2707_v30 = vmax.f32 %v677_v25, 0.0  ;;  %v2709_v31 = vmax.f32 %v676_v24, 0.0  ;;  %v1394_v24 = vld [vmem:[%s2855_s1 + $0x2c8] sm:$0xff] }
 0x4c6   :  { %v2183_v25 = vpack.c.bf16 %v1394_v24, %v1393_v23 }
 0x4c7   :  { %v681_v17 = vrot.slane %v2707_v30, 7  ;;  %v680_v32 = vrot.slane %v2709_v31, 7  ;;  %1806 = vmatprep.mubr.f32.mxu1 %v2709_v31  ;;  %v686_v6 = vrot.slane %v2709_v31, 1  ;;  %v687_v8 = vrot.slane %v2707_v30, 1  ;;  %v1397_v31 = vld [vmem:[%s2855_s1 + $0x2e0] sm:$0xff] }
 0x4c8   :  { %1807 = vmatmul.mubr.f32.vlgmr.msra.gmra.mrb[8].mxu1 %v2707_v30  ;;  %v2187_v30 = vpack.c.bf16 %v1396_v29, %v1395_v26 }
 0x4c9   :  { %2138 = vmatpush3.bf16.msra.mxu1 %v2135_v14  ;;  %v683_v38 = vsel %vm57_vm1, %v681_v17, %v680_v32  ;;  %v682_v11 = vsel %vm57_vm1, %v680_v32, %v681_v17  ;;  %v1390_v14 = vld [vmem:[%s2855_s1 + $0x2a8] sm:$0xff]  ;;  %v688_v18 = vsel %vm64_vm2, %v686_v6, %v687_v8  ;;  %v1399_v32 = vld [vmem:[%s2855_s1 + $0x2f0] sm:$0xff] }
 0x4ca   :  { %2140 = vmatprep.subr.bf16.mxu1 %v2139_v16  ;;  %v684_v40 = vmul.f32 %v2405_v47, %v683_v38  ;;  %v1362_v47 = vld [vmem:[%s2855_s1 + $0x1c8] sm:$0xff]  ;;  %v2175_v19 = vpack.c.bf16 %v1390_v14, %v1389_v13  ;;  %v2195_v37 = vpack.c.bf16 %v1400_v33, %v1399_v32  ;;  %v689_v38 = vsel %vm64_vm2, %v687_v8, %v686_v6 }
 0x4cb   :  { %v2151_v50 = vpack.c.bf16 %v1362_v47, %v1361_v49 }
 0x4cc   :  { %1841 = vmatprep.mubr.f32.mxu1 %v684_v40  ;;  %v691_v40 = vmul.f32 %v2521_v43, %v689_v38 }
 0x4cd   :  { %2142 = vmatpush3.bf16.msra.mxu1 %v2139_v16  ;;  %v1398_v16 = vld [vmem:[%s2855_s1 + $0x2e8] sm:$0xff] }
 0x4ce   :  { %2144 = vmatprep.subr.bf16.mxu1 %v2143_v41  ;;  %v2191_v17 = vpack.c.bf16 %v1398_v16, %v1397_v31 }
 0x4d1   :  { %2146 = vmatpush3.bf16.msra.mxu1 %v2143_v41 }
 0x4d2   :  { %2148 = vmatprep.subr.bf16.mxu1 %v2147_v48 }
 0x4d5   :  { %2150 = vmatpush3.bf16.msra.mxu1 %v2147_v48 }
 0x4d6   :  { %2152 = vmatprep.subr.bf16.mxu1 %v2151_v50 }
 0x4d9   :  { %2154 = vmatpush3.bf16.msra.mxu1 %v2151_v50 }
 0x4da   :  { %2156 = vmatprep.subr.bf16.mxu1 %v2155_v55 }
 0x4dd   :  { %2158 = vmatpush3.bf16.msra.mxu1 %v2155_v55 }
 0x4de   :  { %2160 = vmatprep.subr.bf16.mxu1 %v2159_v59 }
 0x4e1   :  { %2162 = vmatpush3.bf16.msra.mxu1 %v2159_v59 }
 0x4e2   :  { %2164 = vmatprep.subr.bf16.mxu1 %v2163_v63 }
 0x4e5   :  { %2166 = vmatpush3.bf16.msra.mxu1 %v2163_v63 }
 0x4e6   :  { %2168 = vmatprep.subr.bf16.mxu1 %v2167_v2 }
 0x4e8   :  { %1842 = vmatmul.mubr.f32.vlgmr.msra.gmra.mrb[8].mxu1 %v682_v11 }
 0x4e9   :  { %2170 = vmatpush3.bf16.msra.mxu1 %v2167_v2  ;;  %1876 = vmatprep.mubr.f32.mxu1 %v688_v18 }
 0x4ea   :  { %2172 = vmatprep.subr.bf16.mxu1 %v2171_v9 }
 0x4ed   :  { %2174 = vmatpush3.bf16.msra.mxu1 %v2171_v9  ;;  %v1217_v9 = vrot.slane %v2641_v39, 2 }
 0x4ee   :  { %2176 = vmatprep.subr.bf16.mxu1 %v2175_v19 }
 0x4f1   :  { %2178 = vmatpush3.bf16.msra.mxu1 %v2175_v19 }
 0x4f2   :  { %2180 = vmatprep.subr.bf16.mxu1 %v2179_v22 }
 0x4f5   :  { %2182 = vmatpush3.bf16.msra.mxu1 %v2179_v22 }
 0x4f6   :  { %2184 = vmatprep.subr.bf16.mxu1 %v2183_v25 }
 0x4f9   :  { %2186 = vmatpush3.bf16.msra.mxu1 %v2183_v25 }
 0x4fa   :  { %2188 = vmatprep.subr.bf16.mxu1 %v2187_v30 }
 0x4fd   :  { %2190 = vmatpush3.bf16.msra.mxu1 %v2187_v30 }
 0x4fe   :  { %2192 = vmatprep.subr.bf16.mxu1 %v2191_v17 }
 0x501   :  { %2194 = vmatpush3.bf16.msra.mxu1 %v2191_v17 }
 0x502   :  { %2196 = vmatprep.subr.bf16.mxu1 %v2195_v37 }
 0x505   :  { %2198 = vmatpush3.bf16.msra.mxu1 %v2195_v37 }
 0x508   :  { %1877 = vmatmul.mubr.f32.vlgmr.msra.gmra.mrb[8].mxu1 %v691_v40 }
 0x5db   :  { %v1878_v41 = vpop.f32.mrb[8].mxu1 }
 0x5dc   :  { %v959_v42 = vpop.f32.mrb[9].mxu1 }
 0x5dd   :  { %v970_v45 = vadd.f32 %v1878_v41, %v959_v42 }
 0x5df   :  { %v971_v48 = vrot.slane %v970_v45, 4 }
 0x5e1   :  { %v972_v49 = vadd.f32 %v971_v48, %v970_v45 }
 0x5e3   :  { %v973_v47 = vrot.slane %v972_v49, 2 }
 0x5e5   :  { %v974_v50 = vadd.f32 %v973_v47, %v972_v49 }
 0x5e7   :  { %v975_v52 = vrot.slane %v974_v50, 1 }
 0x5e9   :  { %v976_v53 = vadd.f32 %v975_v52, %v974_v50 }
 0x5eb   :  { %1912 = vmatmul.mubr.f32.vlgmr.msra.gmra.mrb[2].mxu0 %v976_v53 }
 0x5ec   :  { %1915 = vmatpush3.msk.msra.mxu0 %vm428_vm5, %v2590_v7  ;;  %1916 = vmatprep.mubr.msk.f32.mxu0 %vm2264_vm4, %v2263_v46 }
 0x5ed   :  { %2223 = vmatprep.subr.bf16.mxu0 %v2262_v3 }
 0x6be   :  { %v1043_v43 = vpop.f32.mrb[2].mxu0 }
 0x6bf   :  { %v1047_v55 = vmul.f32 0.001953125, %v1043_v43  ;;  %v1913_v56 = vpop.f32.mrb[3].mxu0 }
 0x6c1   :  { %1917 = vmatmul.mubr.msk.f32.vlgmr.msra.gmra.mrb[4].mxu0 %vm424_vm6, %v1047_v55 }
 0x6c2   :  { %2225 = vmatpush3.bf16.msra.mxu0 %v2356_v27  ;;  %1951 = vmatprep.mubr.msk.f32.mxu0 %vm2264_vm4, %v2263_v46 }
 0x6c3   :  { %2226 = vmatprep.subr.bf16.mxu0 %v2262_v3 }
 0x6c6   :  { %2228 = vmatpush3.bf16.msra.mxu0 %v2359_v28 }
 0x6c7   :  { %2229 = vmatprep.subr.bf16.mxu0 %v2262_v3 }
 0x6ca   :  { %2231 = vmatpush3.bf16.msra.mxu0 %v2382_v36 }
 0x6cb   :  { %2232 = vmatprep.subr.bf16.mxu0 %v2262_v3 }
 0x6ce   :  { %2234 = vmatpush3.bf16.msra.mxu0 %v2402_v44 }
 0x6cf   :  { %2235 = vmatprep.subr.bf16.mxu0 %v2262_v3 }
 0x6d2   :  { %2237 = vmatpush3.bf16.msra.mxu0 %v2541_v51 }
 0x6d3   :  { %2238 = vmatprep.subr.bf16.mxu0 %v2262_v3 }
 0x6d6   :  { %2240 = vmatpush3.bf16.msra.mxu0 %v2553_v54 }
 0x6d7   :  { %2241 = vmatprep.subr.bf16.mxu0 %v2262_v3 }
 0x6da   :  { %2243 = vmatpush3.bf16.msra.mxu0 %v2565_v57 }
 0x6db   :  { %2244 = vmatprep.subr.bf16.mxu0 %v2262_v3 }
 0x6de   :  { %2246 = vmatpush3.bf16.msra.mxu0 %v2577_v60 }
 0x6df   :  { %1954 = vmatprep.subr.mxu0 %v2263_v46 }
 0x794   :  { %v1117_v27 = vpop.f32.mrb[4].mxu0 }
 0x795   :  { %v1124_v28 = vrot.slane %v1117_v27, %v2617_v12  ;;  %v1918_v36 = vpop.f32.mrb[5].mxu0 }
 0x797   :  { %v1125_v44 = vsub.f32 %v959_v42, %v1124_v28  ;;  %v1126_v51 = vsub.f32 %v1878_v41, %v1124_v28 }
 0x799   :  { %v1127_v58 = vmul.f32 %v1125_v44, %v1125_v44  ;;  %v1128_v59 = vmul.f32 %v1126_v51, %v1126_v51 }
 0x79b   :  { %v1129_v61 = vadd.f32 %v1128_v59, %v1127_v58 }
 0x79d   :  { %v1130_v54 = vrot.slane %v1129_v61, 4 }
 0x79f   :  { %v1131_v62 = vadd.f32 %v1130_v54, %v1129_v61 }
 0x7a1   :  { %v1132_v63 = vrot.slane %v1131_v62, 2 }
 0x7a3   :  { %v1133_v0 = vadd.f32 %v1132_v63, %v1131_v62 }
 0x7a5   :  { %v1134_v57 = vrot.slane %v1133_v0, 1 }
 0x7a7   :  { %v1135_v1 = vadd.f32 %v1134_v57, %v1133_v0 }
 0x7a9   :  { %1952 = vmatmul.mubr.f32.vlgmr.msra.gmra.mrb[6].mxu0 %v1135_v1 }
 0x7aa   :  { %1955 = vmatpush3.msk.msra.mxu0 %vm428_vm5, %v2590_v7  ;;  %1956 = vmatprep.mubr.msk.f32.mxu0 %vm2264_vm4, %v2263_v46 }
 0x87c   :  { %v1202_v3 = vpop.f32.mrb[6].mxu0 }
 0x87d   :  { %v1206_v60 = vmul.f32 0.001953125, %v1202_v3  ;;  %v1953_v2 = vpop.f32.mrb[7].mxu0 }
 0x87f   :  { %v1207_v4 = vadd.f32 1e-05, %v1206_v60 }
 0x881   :  { %2260 = vrsqrt.f32 %v1207_v4 }
 0x88b   :  { %v2261_v5 = vpop.eup %2260 }
 0x88c   :  { %v1210_v6 = vrot.slane %v2261_v5, 6 }
 0x88e   :  { %v1212_v8 = vmul.f32 %v1210_v6, %v2641_v39 }
 0x890   :  { %v1214_v11 = vrot.slane %v1212_v8, 2 }
 0x892   :  { %v1219_v13 = vsel %vm591_vm7, %v1214_v11, %v1217_v9 }
 0x893   :  { %1957 = vmatmul.mubr.msk.f32.vlgmr.msra.gmra.mrb[8].mxu0 %vm424_vm6, %v1219_v13 }
 0x966   :  { %v1289_v7 = vpop.f32.mrb[8].mxu0 }
 0x967   :  { %v1296_v14 = vrot.slane %v1289_v7, %v2617_v12  ;;  %v1958_v46 = vpop.f32.mrb[9].mxu0  ;;  %v1302_v20 = vrot.slane %v1289_v7, %v674_v15 }
 0x969   :  { %v1297_v18 = vmul.f32 %v1296_v14, %v1125_v44  ;;  %v1298_v19 = vmul.f32 %v1296_v14, %v1126_v51 }
 0x96b   :  { %v1303_v21 = vadd.f32 %v1302_v20, %v1297_v18  ;;  %v1304_v22 = vadd.f32 %v1302_v20, %v1298_v19 }
 0x96d   :  { %v1305_v23 = vadd.f32 %v1303_v21, %v2317_v10  ;;  %v1306_v39 = vadd.f32 %v1304_v22, %v2379_v35 }
 0x96f   :  { %v1307_v24 = vmax.f32 %v1305_v23, 0.0  ;;  %v1308_v25 = vmax.f32 %v1306_v39, 0.0 }
 0x971   :  { %1309 = vst [vmem:[%s2860_s5] sm:$0xff] %v1307_v24  ;;  %1310 = vst [vmem:[%s2860_s5 + $0x8] sm:$0xff] %v1308_v25 }

</bundles_post_ra>
